<compile_context>
chip_gen: v7x
topology: tpu7x:2x2x1
jax: 0.10.0
libtpu: 0.0.40
codegen_flags: <defaults>
</compile_context>

<pallas_src>
import functools

import jax
import jax.numpy as jnp
from jax import lax
from jax.experimental import pallas as pl
from jax.experimental.pallas import tpu as pltpu  # noqa: F401  (kept for TPU backend selection)

HIDDEN = 32


# ------------------------------ Fused kernel ---------------------------------
def _fused_kernel(x_ref, wih_ref, whh_ref, b_ref, amask_ref,
                  wout_ref, bout_ref, out_ref, *, Tg, Tt):
    """Whole forward pass (both LSTMs + attention + head) in one invocation.

    x_ref:     (B, Tm, 5)        gaze(3) and text(2) features concatenated,
                                 time-padded to Tm = max(Tg, Tt)
    wih_ref:   (5, 8H)           fused input->gate weights, gate columns
                                 ordered [i_g,i_t,f_g,f_t,g_g,g_t,o_g,o_t],
                                 g columns pre-scaled by 2
    whh_ref:   (2H, 8H)          fused block-diagonal hidden->gate weights
    b_ref:     (1, 8H)           fused combined biases (b_ih + b_hh)
    amask_ref: (Tt*B, Tg*B)      0 where same batch, -1e9 otherwise
    wout_ref:  (1, H)            output Linear weight
    bout_ref:  (1, 1)            output Linear bias
    out_ref:   (Tt*B, 1)         predictions, rows ordered t-major (t*B + b)
    """
    B, Tm, Din = x_ref.shape
    H2, G = whh_ref.shape                     # (2H, 8H)
    H = H2 // 2

    # ---- input projection hoisted out of the recurrence: VPU broadcast-FMAs.
    x = x_ref[...]                            # (B, Tm, 5)
    w_ih = wih_ref[...]                       # (5, 8H)
    xp = b_ref[...].reshape(1, 1, G)          # start from the bias
    for d in range(Din):
        xp = xp + x[:, :, d:d + 1] * w_ih[d][None, None, :]
    # xp: (B, Tm, 8H)

    w_hh = whh_ref[...]                       # (2H, 8H) block diagonal

    h_cat = jnp.zeros((B, H2), jnp.float32)   # [h_gaze | h_text]
    c_cat = jnp.zeros((B, H2), jnp.float32)   # [c_gaze | c_text]
    hs = []

    # Fully unrolled: Tm is static & tiny; one matmul + one sigmoid per step.
    for t in range(Tm):
        pre = xp[:, t, :] + jnp.dot(h_cat, w_hh,
                                    preferred_element_type=jnp.float32)   # (B, 8H)
        sig = jax.nn.sigmoid(pre)             # single EUP pass over all gates
        i_cat = sig[:, 0 * H2:1 * H2]         # [i_g | i_t]
        f_cat = sig[:, 1 * H2:2 * H2]         # [f_g | f_t]
        g_cat = 2.0 * sig[:, 2 * H2:3 * H2] - 1.0   # tanh via 2*sigmoid(2x)-1
        o_cat = sig[:, 3 * H2:4 * H2]         # [o_g | o_t]
        c_cat = f_cat * c_cat + i_cat * g_cat
        h_cat = o_cat * jnp.tanh(c_cat)
        hs.append(h_cat)

    # ---- t-major flattened hidden states (row index = t*B + b), built once.
    Hg = jnp.concatenate([hs[t][:, 0:H] for t in range(Tg)], axis=0)       # (Tg*B, H)
    Ht = jnp.concatenate([hs[t][:, H:2 * H] for t in range(Tt)], axis=0)   # (Tt*B, H)

    # ---- cross attention as one full matmul + additive block-diag batch mask.
    scores = lax.dot_general(Ht, Hg, (((1,), (1,)), ((), ())),
                             preferred_element_type=jnp.float32)           # (Tt*B, Tg*B)
    a = jnp.tanh(scores) + amask_ref[...]      # cross-batch entries -> ~-1e9
    m = jnp.max(a, axis=-1, keepdims=True)
    e = jnp.exp(a - m)                         # masked entries underflow to 0
    attn = e / jnp.sum(e, axis=-1, keepdims=True)
    ctx = jnp.dot(attn, Hg, preferred_element_type=jnp.float32)            # (Tt*B, H)

    # ---- output head Linear(H -> 1).
    pred = jnp.sum(ctx * wout_ref[...], axis=-1, keepdims=True) + bout_ref[...]
    out_ref[...] = pred                        # (Tt*B, 1)


# --------------------------------- Wrapper ------------------------------------
def _gate_cols(W, H):
    """Split (K, 4H) transposed weights into (i, f, g, o) column blocks."""
    return W[:, 0:H], W[:, H:2 * H], W[:, 2 * H:3 * H], W[:, 3 * H:4 * H]


def _pad_time(x, Tm):
    T = x.shape[1]
    if T == Tm:
        return x
    return jnp.pad(x, ((0, 0), (0, Tm - T), (0, 0)))


@jax.jit
def gaze_text_encoder(params, gaze_seq, text_seq):
    """Forward pass matching the PyTorch module. Inputs are batch_first."""
    B, Tg, Dg = gaze_seq.shape
    _, Tt, Dt = text_seq.shape
    H = params["g_w_hh"].shape[1]
    Tm = max(Tg, Tt)

    # ---- per-LSTM transposed blocks, PyTorch gate order [i, f, g, o].
    Wih_g = jnp.transpose(params["g_w_ih"])                # (3, 4H)
    Whh_g = jnp.transpose(params["g_w_hh"])                # (H, 4H)
    b_g = (params["g_b_ih"] + params["g_b_hh"])[None, :]   # (1, 4H)
    Wih_t = jnp.transpose(params["t_w_ih"])                # (2, 4H)
    Whh_t = jnp.transpose(params["t_w_hh"])                # (H, 4H)
    b_t = (params["t_b_ih"] + params["t_b_hh"])[None, :]   # (1, 4H)

    gi, gf, gg, go = _gate_cols(Whh_g, H)
    ti, tf, tg, to = _gate_cols(Whh_t, H)
    xgi, xgf, xgg, xgo = _gate_cols(Wih_g, H)
    xti, xtf, xtg, xto = _gate_cols(Wih_t, H)
    bgi, bgf, bgg, bgo = _gate_cols(b_g, H)
    bti, btf, btg, bto = _gate_cols(b_t, H)

    ZH = jnp.zeros((H, H), jnp.float32)
    Z3 = jnp.zeros((Dg, H), jnp.float32)
    Z2 = jnp.zeros((Dt, H), jnp.float32)

    # Fused gate-column order: [i_g, i_t, f_g, f_t, g_g, g_t, o_g, o_t];
    # g columns pre-scaled by 2 for the tanh(x) = 2*sigmoid(2x)-1 rewrite.
    whh_blk = jnp.concatenate([
        jnp.concatenate([gi, ZH, gf, ZH, 2.0 * gg, ZH, go, ZH], axis=1),
        jnp.concatenate([ZH, ti, ZH, tf, ZH, 2.0 * tg, ZH, to], axis=1),
    ], axis=0)                                                       # (2H, 8H)
    wih_blk = jnp.concatenate([
        jnp.concatenate([xgi, Z3, xgf, Z3, 2.0 * xgg, Z3, xgo, Z3], axis=1),
        jnp.concatenate([Z2, xti, Z2, xtf, Z2, 2.0 * xtg, Z2, xto], axis=1),
    ], axis=0)                                                       # (5, 8H)
    b_blk = jnp.concatenate(
        [bgi, bti, bgf, btf, 2.0 * bgg, 2.0 * btg, bgo, bto], axis=1)  # (1, 8H)

    # Time-padded, feature-concatenated inputs (padding is ignored downstream).
    x_cat = jnp.concatenate([_pad_time(gaze_seq, Tm), _pad_time(text_seq, Tm)],
                            axis=-1)                                 # (B, Tm, 5)

    # Additive block-diagonal batch mask for the collapsed attention matmul
    # (row = t*B + b on both sides): 0 if same batch, -1e9 otherwise.
    rb = jnp.arange(Tt * B, dtype=jnp.int32) % B
    cb = jnp.arange(Tg * B, dtype=jnp.int32) % B
    amask = jnp.where(rb[:, None] == cb[None, :], 0.0, -1e9).astype(jnp.float32)

    w_out = params["out_w"].astype(jnp.float32)                      # (1, H)
    b_out = params["out_b"].reshape(1, 1).astype(jnp.float32)

    kernel = functools.partial(_fused_kernel, Tg=Tg, Tt=Tt)
    pred = pl.pallas_call(
        kernel,
        out_shape=jax.ShapeDtypeStruct((Tt * B, 1), jnp.float32),
    )(x_cat, wih_blk, whh_blk, b_blk, amask, w_out, b_out)

    # rows are t-major (t*B + b) -> (B, Tt, 1)
    return jnp.transpose(pred.reshape(Tt, B, 1), (1, 0, 2))


# ----------------------------- Parameter init ---------------------------------
def init_params(key, hidden_dim=HIDDEN):
    k = 1.0 / jnp.sqrt(jnp.float32(hidden_dim))
    keys = jax.random.split(key, 10)

    def u(rng, shape):
        return jax.random.uniform(rng, shape, jnp.float32, -k, k)

    return {
        # lstm_gaze: input dim 3
        "g_w_ih": u(keys[0], (4 * hidden_dim, 3)),
        "g_w_hh": u(keys[1], (4 * hidden_dim, hidden_dim)),
        "g_b_ih": u(keys[2], (4 * hidden_dim,)),
        "g_b_hh": u(keys[3], (4 * hidden_dim,)),
        # lstm_text: input dim 2
        "t_w_ih": u(keys[4], (4 * hidden_dim, 2)),
        "t_w_hh": u(keys[5], (4 * hidden_dim, hidden_dim)),
        "t_b_ih": u(keys[6], (4 * hidden_dim,)),
        "t_b_hh": u(keys[7], (4 * hidden_dim,)),
        # output_layer: Linear(hidden_dim, 1)
        "out_w": u(keys[8], (1, hidden_dim)),
        "out_b": u(keys[9], (1,)),
    }


# ----------------------------- Pure-JAX reference -----------------------------
def _lstm_ref(x, w_ih, w_hh, b_ih, b_hh):
    B, T, _ = x.shape
    H = w_hh.shape[1]

    def step(carry, x_t):
        h, c = carry
        gates = x_t @ w_ih.T + h @ w_hh.T + b_ih + b_hh
        i_g = jax.nn.sigmoid(gates[:, 0 * H:1 * H])
        f_g = jax.nn.sigmoid(gates[:, 1 * H:2 * H])
        g_g = jnp.tanh(gates[:, 2 * H:3 * H])
        o_g = jax.nn.sigmoid(gates[:, 3 * H:4 * H])
        c = f_g * c + i_g * g_g
        h = o_g * jnp.tanh(c)
        return (h, c), h

    h0 = jnp.zeros((B, H), jnp.float32)
    _, hs = lax.scan(step, (h0, h0), jnp.transpose(x, (1, 0, 2)))
    return jnp.transpose(hs, (1, 0, 2))


def _ref_forward(params, gaze_seq, text_seq):
    h_gaze = _lstm_ref(gaze_seq, params["g_w_ih"], params["g_w_hh"],
                       params["g_b_ih"], params["g_b_hh"])
    h_text = _lstm_ref(text_seq, params["t_w_ih"], params["t_w_hh"],
                       params["t_b_ih"], params["t_b_hh"])
    scores = jnp.einsum("btd,bsd->bts", h_text, h_gaze)
    attn = jax.nn.softmax(jnp.tanh(scores), axis=-1)
    ctx = jnp.einsum("bts,bsd->btd", attn, h_gaze)
    return ctx @ params["out_w"].T + params["out_b"]


# ------------------------------------ Main -------------------------------------
if __name__ == "__main__":
    key = jax.random.PRNGKey(0)
    k_param, k_gaze, k_text = jax.random.split(key, 3)

    B, T_gaze, T_text = 2, 8, 8
    gaze_seq = jax.random.normal(k_gaze, (B, T_gaze, 3), jnp.float32)
    text_seq = jax.random.normal(k_text, (B, T_text, 2), jnp.float32)

    params = init_params(k_param, HIDDEN)

    out = gaze_text_encoder(params, gaze_seq, text_seq)
    out = jax.block_until_ready(out)

    ref = _ref_forward(params, gaze_seq, text_seq)
    assert out.shape == (B, T_text, 1), out.shape
    assert jnp.allclose(out, ref, atol=5e-4, rtol=5e-4), (
        float(jnp.max(jnp.abs(out - ref))))

    print("KERNEL_OK")
</pallas_src>

<mosaic_0001>
module attributes {stable_mosaic.version = 11 : i64} {
  func.func @_fused_kernel(%arg0: memref<2x8x5xf32, #tpu.memory_space<vmem>>, %arg1: memref<5x256xf32, #tpu.memory_space<vmem>>, %arg2: memref<64x256xf32, #tpu.memory_space<vmem>>, %arg3: memref<1x256xf32, #tpu.memory_space<vmem>>, %arg4: memref<16x16xf32, #tpu.memory_space<vmem>>, %arg5: memref<1x32xf32, #tpu.memory_space<vmem>>, %arg6: memref<1x1xf32, #tpu.memory_space<vmem>>, %arg7: memref<16x1xf32, #tpu.memory_space<vmem>>) attributes {dimension_semantics = [], scalar_prefetch = 0 : i64, scratch_operands = 0 : i64, tpu.core_type = #tpu.core_type<tc>} {
    %c0 = arith.constant 0 : index
    %c0_0 = arith.constant 0 : index
    %c0_1 = arith.constant 0 : index
    %0 = vector.load %arg0[%c0, %c0_0, %c0_1] : memref<2x8x5xf32, #tpu.memory_space<vmem>>, vector<2x8x5xf32>
    %c0_2 = arith.constant 0 : index
    %c0_3 = arith.constant 0 : index
    %1 = vector.load %arg1[%c0_2, %c0_3] : memref<5x256xf32, #tpu.memory_space<vmem>>, vector<5x256xf32>
    %c0_4 = arith.constant 0 : index
    %c0_5 = arith.constant 0 : index
    %2 = vector.load %arg3[%c0_4, %c0_5] : memref<1x256xf32, #tpu.memory_space<vmem>>, vector<1x256xf32>
    %3 = vector.shape_cast %2 : vector<1x256xf32> to vector<1x1x256xf32>
    %4 = vector.extract_strided_slice %0 {offsets = [0, 0, 0], sizes = [2, 8, 1], strides = [1, 1, 1]} : vector<2x8x5xf32> to vector<2x8x1xf32>
    %5 = vector.extract_strided_slice %1 {offsets = [0, 0], sizes = [1, 256], strides = [1, 1]} : vector<5x256xf32> to vector<1x256xf32>
    %6 = vector.shape_cast %5 : vector<1x256xf32> to vector<256xf32>
    %7 = vector.shape_cast %6 : vector<256xf32> to vector<1x1x256xf32>
    %8 = vector.broadcast %4 : vector<2x8x1xf32> to vector<2x8x256xf32>
    %9 = vector.broadcast %7 : vector<1x1x256xf32> to vector<2x8x256xf32>
    %10 = arith.mulf %8, %9 : vector<2x8x256xf32>
    %11 = vector.broadcast %3 : vector<1x1x256xf32> to vector<2x8x256xf32>
    %12 = arith.addf %11, %10 : vector<2x8x256xf32>
    %13 = vector.extract_strided_slice %0 {offsets = [0, 0, 1], sizes = [2, 8, 1], strides = [1, 1, 1]} : vector<2x8x5xf32> to vector<2x8x1xf32>
    %14 = vector.extract_strided_slice %1 {offsets = [1, 0], sizes = [1, 256], strides = [1, 1]} : vector<5x256xf32> to vector<1x256xf32>
    %15 = vector.shape_cast %14 : vector<1x256xf32> to vector<256xf32>
    %16 = vector.shape_cast %15 : vector<256xf32> to vector<1x1x256xf32>
    %17 = vector.broadcast %13 : vector<2x8x1xf32> to vector<2x8x256xf32>
    %18 = vector.broadcast %16 : vector<1x1x256xf32> to vector<2x8x256xf32>
    %19 = arith.mulf %17, %18 : vector<2x8x256xf32>
    %20 = arith.addf %12, %19 : vector<2x8x256xf32>
    %21 = vector.extract_strided_slice %0 {offsets = [0, 0, 2], sizes = [2, 8, 1], strides = [1, 1, 1]} : vector<2x8x5xf32> to vector<2x8x1xf32>
    %22 = vector.extract_strided_slice %1 {offsets = [2, 0], sizes = [1, 256], strides = [1, 1]} : vector<5x256xf32> to vector<1x256xf32>
    %23 = vector.shape_cast %22 : vector<1x256xf32> to vector<256xf32>
    %24 = vector.shape_cast %23 : vector<256xf32> to vector<1x1x256xf32>
    %25 = vector.broadcast %21 : vector<2x8x1xf32> to vector<2x8x256xf32>
    %26 = vector.broadcast %24 : vector<1x1x256xf32> to vector<2x8x256xf32>
    %27 = arith.mulf %25, %26 : vector<2x8x256xf32>
    %28 = arith.addf %20, %27 : vector<2x8x256xf32>
    %29 = vector.extract_strided_slice %0 {offsets = [0, 0, 3], sizes = [2, 8, 1], strides = [1, 1, 1]} : vector<2x8x5xf32> to vector<2x8x1xf32>
    %30 = vector.extract_strided_slice %1 {offsets = [3, 0], sizes = [1, 256], strides = [1, 1]} : vector<5x256xf32> to vector<1x256xf32>
    %31 = vector.shape_cast %30 : vector<1x256xf32> to vector<256xf32>
    %32 = vector.shape_cast %31 : vector<256xf32> to vector<1x1x256xf32>
    %33 = vector.broadcast %29 : vector<2x8x1xf32> to vector<2x8x256xf32>
    %34 = vector.broadcast %32 : vector<1x1x256xf32> to vector<2x8x256xf32>
    %35 = arith.mulf %33, %34 : vector<2x8x256xf32>
    %36 = arith.addf %28, %35 : vector<2x8x256xf32>
    %37 = vector.extract_strided_slice %0 {offsets = [0, 0, 4], sizes = [2, 8, 1], strides = [1, 1, 1]} : vector<2x8x5xf32> to vector<2x8x1xf32>
    %38 = vector.extract_strided_slice %1 {offsets = [4, 0], sizes = [1, 256], strides = [1, 1]} : vector<5x256xf32> to vector<1x256xf32>
    %39 = vector.shape_cast %38 : vector<1x256xf32> to vector<256xf32>
    %40 = vector.shape_cast %39 : vector<256xf32> to vector<1x1x256xf32>
    %41 = vector.broadcast %37 : vector<2x8x1xf32> to vector<2x8x256xf32>
    %42 = vector.broadcast %40 : vector<1x1x256xf32> to vector<2x8x256xf32>
    %43 = arith.mulf %41, %42 : vector<2x8x256xf32>
    %44 = arith.addf %36, %43 : vector<2x8x256xf32>
    %c0_6 = arith.constant 0 : index
    %c0_7 = arith.constant 0 : index
    %45 = vector.load %arg2[%c0_6, %c0_7] : memref<64x256xf32, #tpu.memory_space<vmem>>, vector<64x256xf32>
    %cst = arith.constant 0.000000e+00 : f32
    %46 = vector.broadcast %cst : f32 to vector<2x64xf32>
    %cst_8 = arith.constant 0.000000e+00 : f32
    %47 = vector.broadcast %cst_8 : f32 to vector<2x64xf32>
    %48 = vector.extract_strided_slice %44 {offsets = [0, 0, 0], sizes = [2, 1, 256], strides = [1, 1, 1]} : vector<2x8x256xf32> to vector<2x1x256xf32>
    %49 = vector.shape_cast %48 : vector<2x1x256xf32> to vector<2x256xf32>
    %cst_9 = arith.constant dense<0.000000e+00> : vector<2x256xf32>
    %50 = tpu.matmul %46, %45, %cst_9 {dimension_numbers = #tpu.dot_dimension_numbers<[1], [0], [0], [1], [0, 0, 1, 1], [], []>} : vector<2x64xf32>, vector<64x256xf32>, vector<2x256xf32> -> vector<2x256xf32>
    %51 = arith.addf %49, %50 : vector<2x256xf32>
    %52 = arith.negf %51 : vector<2x256xf32>
    %53 = math.exp %52 : vector<2x256xf32>
    %cst_10 = arith.constant 1.000000e+00 : f32
    %54 = vector.broadcast %cst_10 : f32 to vector<2x256xf32>
    %55 = arith.addf %54, %53 : vector<2x256xf32>
    %56 = arith.divf %54, %55 : vector<2x256xf32>
    %57 = vector.extract_strided_slice %56 {offsets = [0, 0], sizes = [2, 64], strides = [1, 1]} : vector<2x256xf32> to vector<2x64xf32>
    %58 = vector.extract_strided_slice %56 {offsets = [0, 64], sizes = [2, 64], strides = [1, 1]} : vector<2x256xf32> to vector<2x64xf32>
    %59 = vector.extract_strided_slice %56 {offsets = [0, 128], sizes = [2, 64], strides = [1, 1]} : vector<2x256xf32> to vector<2x64xf32>
    %cst_11 = arith.constant 2.000000e+00 : f32
    %60 = vector.broadcast %cst_11 : f32 to vector<2x64xf32>
    %61 = arith.mulf %60, %59 : vector<2x64xf32>
    %cst_12 = arith.constant 1.000000e+00 : f32
    %62 = vector.broadcast %cst_12 : f32 to vector<2x64xf32>
    %63 = arith.subf %61, %62 : vector<2x64xf32>
    %64 = vector.extract_strided_slice %56 {offsets = [0, 192], sizes = [2, 64], strides = [1, 1]} : vector<2x256xf32> to vector<2x64xf32>
    %65 = arith.mulf %58, %47 : vector<2x64xf32>
    %66 = arith.mulf %57, %63 : vector<2x64xf32>
    %67 = arith.addf %65, %66 : vector<2x64xf32>
    %68 = math.tanh %67 : vector<2x64xf32>
    %69 = arith.mulf %64, %68 : vector<2x64xf32>
    %70 = vector.extract_strided_slice %44 {offsets = [0, 1, 0], sizes = [2, 1, 256], strides = [1, 1, 1]} : vector<2x8x256xf32> to vector<2x1x256xf32>
    %71 = vector.shape_cast %70 : vector<2x1x256xf32> to vector<2x256xf32>
    %cst_13 = arith.constant dense<0.000000e+00> : vector<2x256xf32>
    %72 = tpu.matmul %69, %45, %cst_13 {dimension_numbers = #tpu.dot_dimension_numbers<[1], [0], [0], [1], [0, 0, 1, 1], [], []>} : vector<2x64xf32>, vector<64x256xf32>, vector<2x256xf32> -> vector<2x256xf32>
    %73 = arith.addf %71, %72 : vector<2x256xf32>
    %74 = arith.negf %73 : vector<2x256xf32>
    %75 = math.exp %74 : vector<2x256xf32>
    %cst_14 = arith.constant 1.000000e+00 : f32
    %76 = vector.broadcast %cst_14 : f32 to vector<2x256xf32>
    %77 = arith.addf %76, %75 : vector<2x256xf32>
    %78 = arith.divf %76, %77 : vector<2x256xf32>
    %79 = vector.extract_strided_slice %78 {offsets = [0, 0], sizes = [2, 64], strides = [1, 1]} : vector<2x256xf32> to vector<2x64xf32>
    %80 = vector.extract_strided_slice %78 {offsets = [0, 64], sizes = [2, 64], strides = [1, 1]} : vector<2x256xf32> to vector<2x64xf32>
    %81 = vector.extract_strided_slice %78 {offsets = [0, 128], sizes = [2, 64], strides = [1, 1]} : vector<2x256xf32> to vector<2x64xf32>
    %cst_15 = arith.constant 2.000000e+00 : f32
    %82 = vector.broadcast %cst_15 : f32 to vector<2x64xf32>
    %83 = arith.mulf %82, %81 : vector<2x64xf32>
    %cst_16 = arith.constant 1.000000e+00 : f32
    %84 = vector.broadcast %cst_16 : f32 to vector<2x64xf32>
    %85 = arith.subf %83, %84 : vector<2x64xf32>
    %86 = vector.extract_strided_slice %78 {offsets = [0, 192], sizes = [2, 64], strides = [1, 1]} : vector<2x256xf32> to vector<2x64xf32>
    %87 = arith.mulf %80, %67 : vector<2x64xf32>
    %88 = arith.mulf %79, %85 : vector<2x64xf32>
    %89 = arith.addf %87, %88 : vector<2x64xf32>
    %90 = math.tanh %89 : vector<2x64xf32>
    %91 = arith.mulf %86, %90 : vector<2x64xf32>
    %92 = vector.extract_strided_slice %44 {offsets = [0, 2, 0], sizes = [2, 1, 256], strides = [1, 1, 1]} : vector<2x8x256xf32> to vector<2x1x256xf32>
    %93 = vector.shape_cast %92 : vector<2x1x256xf32> to vector<2x256xf32>
    %cst_17 = arith.constant dense<0.000000e+00> : vector<2x256xf32>
    %94 = tpu.matmul %91, %45, %cst_17 {dimension_numbers = #tpu.dot_dimension_numbers<[1], [0], [0], [1], [0, 0, 1, 1], [], []>} : vector<2x64xf32>, vector<64x256xf32>, vector<2x256xf32> -> vector<2x256xf32>
    %95 = arith.addf %93, %94 : vector<2x256xf32>
    %96 = arith.negf %95 : vector<2x256xf32>
    %97 = math.exp %96 : vector<2x256xf32>
    %cst_18 = arith.constant 1.000000e+00 : f32
    %98 = vector.broadcast %cst_18 : f32 to vector<2x256xf32>
    %99 = arith.addf %98, %97 : vector<2x256xf32>
    %100 = arith.divf %98, %99 : vector<2x256xf32>
    %101 = vector.extract_strided_slice %100 {offsets = [0, 0], sizes = [2, 64], strides = [1, 1]} : vector<2x256xf32> to vector<2x64xf32>
    %102 = vector.extract_strided_slice %100 {offsets = [0, 64], sizes = [2, 64], strides = [1, 1]} : vector<2x256xf32> to vector<2x64xf32>
    %103 = vector.extract_strided_slice %100 {offsets = [0, 128], sizes = [2, 64], strides = [1, 1]} : vector<2x256xf32> to vector<2x64xf32>
    %cst_19 = arith.constant 2.000000e+00 : f32
    %104 = vector.broadcast %cst_19 : f32 to vector<2x64xf32>
    %105 = arith.mulf %104, %103 : vector<2x64xf32>
    %cst_20 = arith.constant 1.000000e+00 : f32
    %106 = vector.broadcast %cst_20 : f32 to vector<2x64xf32>
    %107 = arith.subf %105, %106 : vector<2x64xf32>
    %108 = vector.extract_strided_slice %100 {offsets = [0, 192], sizes = [2, 64], strides = [1, 1]} : vector<2x256xf32> to vector<2x64xf32>
    %109 = arith.mulf %102, %89 : vector<2x64xf32>
    %110 = arith.mulf %101, %107 : vector<2x64xf32>
    %111 = arith.addf %109, %110 : vector<2x64xf32>
    %112 = math.tanh %111 : vector<2x64xf32>
    %113 = arith.mulf %108, %112 : vector<2x64xf32>
    %114 = vector.extract_strided_slice %44 {offsets = [0, 3, 0], sizes = [2, 1, 256], strides = [1, 1, 1]} : vector<2x8x256xf32> to vector<2x1x256xf32>
    %115 = vector.shape_cast %114 : vector<2x1x256xf32> to vector<2x256xf32>
    %cst_21 = arith.constant dense<0.000000e+00> : vector<2x256xf32>
    %116 = tpu.matmul %113, %45, %cst_21 {dimension_numbers = #tpu.dot_dimension_numbers<[1], [0], [0], [1], [0, 0, 1, 1], [], []>} : vector<2x64xf32>, vector<64x256xf32>, vector<2x256xf32> -> vector<2x256xf32>
    %117 = arith.addf %115, %116 : vector<2x256xf32>
    %118 = arith.negf %117 : vector<2x256xf32>
    %119 = math.exp %118 : vector<2x256xf32>
    %cst_22 = arith.constant 1.000000e+00 : f32
    %120 = vector.broadcast %cst_22 : f32 to vector<2x256xf32>
    %121 = arith.addf %120, %119 : vector<2x256xf32>
    %122 = arith.divf %120, %121 : vector<2x256xf32>
    %123 = vector.extract_strided_slice %122 {offsets = [0, 0], sizes = [2, 64], strides = [1, 1]} : vector<2x256xf32> to vector<2x64xf32>
    %124 = vector.extract_strided_slice %122 {offsets = [0, 64], sizes = [2, 64], strides = [1, 1]} : vector<2x256xf32> to vector<2x64xf32>
    %125 = vector.extract_strided_slice %122 {offsets = [0, 128], sizes = [2, 64], strides = [1, 1]} : vector<2x256xf32> to vector<2x64xf32>
    %cst_23 = arith.constant 2.000000e+00 : f32
    %126 = vector.broadcast %cst_23 : f32 to vector<2x64xf32>
    %127 = arith.mulf %126, %125 : vector<2x64xf32>
    %cst_24 = arith.constant 1.000000e+00 : f32
    %128 = vector.broadcast %cst_24 : f32 to vector<2x64xf32>
    %129 = arith.subf %127, %128 : vector<2x64xf32>
    %130 = vector.extract_strided_slice %122 {offsets = [0, 192], sizes = [2, 64], strides = [1, 1]} : vector<2x256xf32> to vector<2x64xf32>
    %131 = arith.mulf %124, %111 : vector<2x64xf32>
    %132 = arith.mulf %123, %129 : vector<2x64xf32>
    %133 = arith.addf %131, %132 : vector<2x64xf32>
    %134 = math.tanh %133 : vector<2x64xf32>
    %135 = arith.mulf %130, %134 : vector<2x64xf32>
    %136 = vector.extract_strided_slice %44 {offsets = [0, 4, 0], sizes = [2, 1, 256], strides = [1, 1, 1]} : vector<2x8x256xf32> to vector<2x1x256xf32>
    %137 = vector.shape_cast %136 : vector<2x1x256xf32> to vector<2x256xf32>
    %cst_25 = arith.constant dense<0.000000e+00> : vector<2x256xf32>
    %138 = tpu.matmul %135, %45, %cst_25 {dimension_numbers = #tpu.dot_dimension_numbers<[1], [0], [0], [1], [0, 0, 1, 1], [], []>} : vector<2x64xf32>, vector<64x256xf32>, vector<2x256xf32> -> vector<2x256xf32>
    %139 = arith.addf %137, %138 : vector<2x256xf32>
    %140 = arith.negf %139 : vector<2x256xf32>
    %141 = math.exp %140 : vector<2x256xf32>
    %cst_26 = arith.constant 1.000000e+00 : f32
    %142 = vector.broadcast %cst_26 : f32 to vector<2x256xf32>
    %143 = arith.addf %142, %141 : vector<2x256xf32>
    %144 = arith.divf %142, %143 : vector<2x256xf32>
    %145 = vector.extract_strided_slice %144 {offsets = [0, 0], sizes = [2, 64], strides = [1, 1]} : vector<2x256xf32> to vector<2x64xf32>
    %146 = vector.extract_strided_slice %144 {offsets = [0, 64], sizes = [2, 64], strides = [1, 1]} : vector<2x256xf32> to vector<2x64xf32>
    %147 = vector.extract_strided_slice %144 {offsets = [0, 128], sizes = [2, 64], strides = [1, 1]} : vector<2x256xf32> to vector<2x64xf32>
    %cst_27 = arith.constant 2.000000e+00 : f32
    %148 = vector.broadcast %cst_27 : f32 to vector<2x64xf32>
    %149 = arith.mulf %148, %147 : vector<2x64xf32>
    %cst_28 = arith.constant 1.000000e+00 : f32
    %150 = vector.broadcast %cst_28 : f32 to vector<2x64xf32>
    %151 = arith.subf %149, %150 : vector<2x64xf32>
    %152 = vector.extract_strided_slice %144 {offsets = [0, 192], sizes = [2, 64], strides = [1, 1]} : vector<2x256xf32> to vector<2x64xf32>
    %153 = arith.mulf %146, %133 : vector<2x64xf32>
    %154 = arith.mulf %145, %151 : vector<2x64xf32>
    %155 = arith.addf %153, %154 : vector<2x64xf32>
    %156 = math.tanh %155 : vector<2x64xf32>
    %157 = arith.mulf %152, %156 : vector<2x64xf32>
    %158 = vector.extract_strided_slice %44 {offsets = [0, 5, 0], sizes = [2, 1, 256], strides = [1, 1, 1]} : vector<2x8x256xf32> to vector<2x1x256xf32>
    %159 = vector.shape_cast %158 : vector<2x1x256xf32> to vector<2x256xf32>
    %cst_29 = arith.constant dense<0.000000e+00> : vector<2x256xf32>
    %160 = tpu.matmul %157, %45, %cst_29 {dimension_numbers = #tpu.dot_dimension_numbers<[1], [0], [0], [1], [0, 0, 1, 1], [], []>} : vector<2x64xf32>, vector<64x256xf32>, vector<2x256xf32> -> vector<2x256xf32>
    %161 = arith.addf %159, %160 : vector<2x256xf32>
    %162 = arith.negf %161 : vector<2x256xf32>
    %163 = math.exp %162 : vector<2x256xf32>
    %cst_30 = arith.constant 1.000000e+00 : f32
    %164 = vector.broadcast %cst_30 : f32 to vector<2x256xf32>
    %165 = arith.addf %164, %163 : vector<2x256xf32>
    %166 = arith.divf %164, %165 : vector<2x256xf32>
    %167 = vector.extract_strided_slice %166 {offsets = [0, 0], sizes = [2, 64], strides = [1, 1]} : vector<2x256xf32> to vector<2x64xf32>
    %168 = vector.extract_strided_slice %166 {offsets = [0, 64], sizes = [2, 64], strides = [1, 1]} : vector<2x256xf32> to vector<2x64xf32>
    %169 = vector.extract_strided_slice %166 {offsets = [0, 128], sizes = [2, 64], strides = [1, 1]} : vector<2x256xf32> to vector<2x64xf32>
    %cst_31 = arith.constant 2.000000e+00 : f32
    %170 = vector.broadcast %cst_31 : f32 to vector<2x64xf32>
    %171 = arith.mulf %170, %169 : vector<2x64xf32>
    %cst_32 = arith.constant 1.000000e+00 : f32
    %172 = vector.broadcast %cst_32 : f32 to vector<2x64xf32>
    %173 = arith.subf %171, %172 : vector<2x64xf32>
    %174 = vector.extract_strided_slice %166 {offsets = [0, 192], sizes = [2, 64], strides = [1, 1]} : vector<2x256xf32> to vector<2x64xf32>
    %175 = arith.mulf %168, %155 : vector<2x64xf32>
    %176 = arith.mulf %167, %173 : vector<2x64xf32>
    %177 = arith.addf %175, %176 : vector<2x64xf32>
    %178 = math.tanh %177 : vector<2x64xf32>
    %179 = arith.mulf %174, %178 : vector<2x64xf32>
    %180 = vector.extract_strided_slice %44 {offsets = [0, 6, 0], sizes = [2, 1, 256], strides = [1, 1, 1]} : vector<2x8x256xf32> to vector<2x1x256xf32>
    %181 = vector.shape_cast %180 : vector<2x1x256xf32> to vector<2x256xf32>
    %cst_33 = arith.constant dense<0.000000e+00> : vector<2x256xf32>
    %182 = tpu.matmul %179, %45, %cst_33 {dimension_numbers = #tpu.dot_dimension_numbers<[1], [0], [0], [1], [0, 0, 1, 1], [], []>} : vector<2x64xf32>, vector<64x256xf32>, vector<2x256xf32> -> vector<2x256xf32>
    %183 = arith.addf %181, %182 : vector<2x256xf32>
    %184 = arith.negf %183 : vector<2x256xf32>
    %185 = math.exp %184 : vector<2x256xf32>
    %cst_34 = arith.constant 1.000000e+00 : f32
    %186 = vector.broadcast %cst_34 : f32 to vector<2x256xf32>
    %187 = arith.addf %186, %185 : vector<2x256xf32>
    %188 = arith.divf %186, %187 : vector<2x256xf32>
    %189 = vector.extract_strided_slice %188 {offsets = [0, 0], sizes = [2, 64], strides = [1, 1]} : vector<2x256xf32> to vector<2x64xf32>
    %190 = vector.extract_strided_slice %188 {offsets = [0, 64], sizes = [2, 64], strides = [1, 1]} : vector<2x256xf32> to vector<2x64xf32>
    %191 = vector.extract_strided_slice %188 {offsets = [0, 128], sizes = [2, 64], strides = [1, 1]} : vector<2x256xf32> to vector<2x64xf32>
    %cst_35 = arith.constant 2.000000e+00 : f32
    %192 = vector.broadcast %cst_35 : f32 to vector<2x64xf32>
    %193 = arith.mulf %192, %191 : vector<2x64xf32>
    %cst_36 = arith.constant 1.000000e+00 : f32
    %194 = vector.broadcast %cst_36 : f32 to vector<2x64xf32>
    %195 = arith.subf %193, %194 : vector<2x64xf32>
    %196 = vector.extract_strided_slice %188 {offsets = [0, 192], sizes = [2, 64], strides = [1, 1]} : vector<2x256xf32> to vector<2x64xf32>
    %197 = arith.mulf %190, %177 : vector<2x64xf32>
    %198 = arith.mulf %189, %195 : vector<2x64xf32>
    %199 = arith.addf %197, %198 : vector<2x64xf32>
    %200 = math.tanh %199 : vector<2x64xf32>
    %201 = arith.mulf %196, %200 : vector<2x64xf32>
    %202 = vector.extract_strided_slice %44 {offsets = [0, 7, 0], sizes = [2, 1, 256], strides = [1, 1, 1]} : vector<2x8x256xf32> to vector<2x1x256xf32>
    %203 = vector.shape_cast %202 : vector<2x1x256xf32> to vector<2x256xf32>
    %cst_37 = arith.constant dense<0.000000e+00> : vector<2x256xf32>
    %204 = tpu.matmul %201, %45, %cst_37 {dimension_numbers = #tpu.dot_dimension_numbers<[1], [0], [0], [1], [0, 0, 1, 1], [], []>} : vector<2x64xf32>, vector<64x256xf32>, vector<2x256xf32> -> vector<2x256xf32>
    %205 = arith.addf %203, %204 : vector<2x256xf32>
    %206 = arith.negf %205 : vector<2x256xf32>
    %207 = math.exp %206 : vector<2x256xf32>
    %cst_38 = arith.constant 1.000000e+00 : f32
    %208 = vector.broadcast %cst_38 : f32 to vector<2x256xf32>
    %209 = arith.addf %208, %207 : vector<2x256xf32>
    %210 = arith.divf %208, %209 : vector<2x256xf32>
    %211 = vector.extract_strided_slice %210 {offsets = [0, 0], sizes = [2, 64], strides = [1, 1]} : vector<2x256xf32> to vector<2x64xf32>
    %212 = vector.extract_strided_slice %210 {offsets = [0, 64], sizes = [2, 64], strides = [1, 1]} : vector<2x256xf32> to vector<2x64xf32>
    %213 = vector.extract_strided_slice %210 {offsets = [0, 128], sizes = [2, 64], strides = [1, 1]} : vector<2x256xf32> to vector<2x64xf32>
    %cst_39 = arith.constant 2.000000e+00 : f32
    %214 = vector.broadcast %cst_39 : f32 to vector<2x64xf32>
    %215 = arith.mulf %214, %213 : vector<2x64xf32>
    %cst_40 = arith.constant 1.000000e+00 : f32
    %216 = vector.broadcast %cst_40 : f32 to vector<2x64xf32>
    %217 = arith.subf %215, %216 : vector<2x64xf32>
    %218 = vector.extract_strided_slice %210 {offsets = [0, 192], sizes = [2, 64], strides = [1, 1]} : vector<2x256xf32> to vector<2x64xf32>
    %219 = arith.mulf %212, %199 : vector<2x64xf32>
    %220 = arith.mulf %211, %217 : vector<2x64xf32>
    %221 = arith.addf %219, %220 : vector<2x64xf32>
    %222 = math.tanh %221 : vector<2x64xf32>
    %223 = arith.mulf %218, %222 : vector<2x64xf32>
    %224 = vector.extract_strided_slice %69 {offsets = [0, 0], sizes = [2, 32], strides = [1, 1]} : vector<2x64xf32> to vector<2x32xf32>
    %225 = vector.extract_strided_slice %91 {offsets = [0, 0], sizes = [2, 32], strides = [1, 1]} : vector<2x64xf32> to vector<2x32xf32>
    %226 = vector.extract_strided_slice %113 {offsets = [0, 0], sizes = [2, 32], strides = [1, 1]} : vector<2x64xf32> to vector<2x32xf32>
    %227 = vector.extract_strided_slice %135 {offsets = [0, 0], sizes = [2, 32], strides = [1, 1]} : vector<2x64xf32> to vector<2x32xf32>
    %228 = vector.extract_strided_slice %157 {offsets = [0, 0], sizes = [2, 32], strides = [1, 1]} : vector<2x64xf32> to vector<2x32xf32>
    %229 = vector.extract_strided_slice %179 {offsets = [0, 0], sizes = [2, 32], strides = [1, 1]} : vector<2x64xf32> to vector<2x32xf32>
    %230 = vector.extract_strided_slice %201 {offsets = [0, 0], sizes = [2, 32], strides = [1, 1]} : vector<2x64xf32> to vector<2x32xf32>
    %231 = vector.extract_strided_slice %223 {offsets = [0, 0], sizes = [2, 32], strides = [1, 1]} : vector<2x64xf32> to vector<2x32xf32>
    %232 = tpu.concatenate %224, %225, %226, %227, %228, %229, %230, %231 in 0 : vector<2x32xf32>, vector<2x32xf32>, vector<2x32xf32>, vector<2x32xf32>, vector<2x32xf32>, vector<2x32xf32>, vector<2x32xf32>, vector<2x32xf32> -> vector<16x32xf32>
    %233 = vector.extract_strided_slice %69 {offsets = [0, 32], sizes = [2, 32], strides = [1, 1]} : vector<2x64xf32> to vector<2x32xf32>
    %234 = vector.extract_strided_slice %91 {offsets = [0, 32], sizes = [2, 32], strides = [1, 1]} : vector<2x64xf32> to vector<2x32xf32>
    %235 = vector.extract_strided_slice %113 {offsets = [0, 32], sizes = [2, 32], strides = [1, 1]} : vector<2x64xf32> to vector<2x32xf32>
    %236 = vector.extract_strided_slice %135 {offsets = [0, 32], sizes = [2, 32], strides = [1, 1]} : vector<2x64xf32> to vector<2x32xf32>
    %237 = vector.extract_strided_slice %157 {offsets = [0, 32], sizes = [2, 32], strides = [1, 1]} : vector<2x64xf32> to vector<2x32xf32>
    %238 = vector.extract_strided_slice %179 {offsets = [0, 32], sizes = [2, 32], strides = [1, 1]} : vector<2x64xf32> to vector<2x32xf32>
    %239 = vector.extract_strided_slice %201 {offsets = [0, 32], sizes = [2, 32], strides = [1, 1]} : vector<2x64xf32> to vector<2x32xf32>
    %240 = vector.extract_strided_slice %223 {offsets = [0, 32], sizes = [2, 32], strides = [1, 1]} : vector<2x64xf32> to vector<2x32xf32>
    %241 = tpu.concatenate %233, %234, %235, %236, %237, %238, %239, %240 in 0 : vector<2x32xf32>, vector<2x32xf32>, vector<2x32xf32>, vector<2x32xf32>, vector<2x32xf32>, vector<2x32xf32>, vector<2x32xf32>, vector<2x32xf32> -> vector<16x32xf32>
    %cst_41 = arith.constant dense<0.000000e+00> : vector<16x16xf32>
    %242 = tpu.matmul %241, %232, %cst_41 {dimension_numbers = #tpu.dot_dimension_numbers<[1], [1], [0], [0], [0, 0, 1, 0], [], []>} : vector<16x32xf32>, vector<16x32xf32>, vector<16x16xf32> -> vector<16x16xf32>
    %243 = math.tanh %242 : vector<16x16xf32>
    %c0_42 = arith.constant 0 : index
    %c0_43 = arith.constant 0 : index
    %244 = vector.load %arg4[%c0_42, %c0_43] : memref<16x16xf32, #tpu.memory_space<vmem>>, vector<16x16xf32>
    %245 = arith.addf %243, %244 : vector<16x16xf32>
    %cst_44 = arith.constant dense<0xFF800000> : vector<16xf32>
    %246 = vector.multi_reduction <maximumf>, %245, %cst_44 [1] : vector<16x16xf32> to vector<16xf32>
    %247 = vector.shape_cast %246 : vector<16xf32> to vector<16x1xf32>
    %248 = vector.broadcast %247 : vector<16x1xf32> to vector<16x16xf32>
    %249 = arith.subf %245, %248 : vector<16x16xf32>
    %250 = math.exp %249 : vector<16x16xf32>
    %cst_45 = arith.constant dense<0.000000e+00> : vector<16xf32>
    %251 = vector.multi_reduction <add>, %250, %cst_45 [1] : vector<16x16xf32> to vector<16xf32>
    %252 = vector.shape_cast %251 : vector<16xf32> to vector<16x1xf32>
    %253 = vector.broadcast %252 : vector<16x1xf32> to vector<16x16xf32>
    %254 = arith.divf %250, %253 : vector<16x16xf32>
    %cst_46 = arith.constant dense<0.000000e+00> : vector<16x32xf32>
    %255 = tpu.matmul %254, %232, %cst_46 {dimension_numbers = #tpu.dot_dimension_numbers<[1], [0], [0], [1], [0, 0, 1, 1], [], []>} : vector<16x16xf32>, vector<16x32xf32>, vector<16x32xf32> -> vector<16x32xf32>
    %c0_47 = arith.constant 0 : index
    %c0_48 = arith.constant 0 : index
    %256 = vector.load %arg5[%c0_47, %c0_48] : memref<1x32xf32, #tpu.memory_space<vmem>>, vector<1x32xf32>
    %257 = vector.broadcast %256 : vector<1x32xf32> to vector<16x32xf32>
    %258 = arith.mulf %255, %257 : vector<16x32xf32>
    %cst_49 = arith.constant dense<0.000000e+00> : vector<16xf32>
    %259 = vector.multi_reduction <add>, %258, %cst_49 [1] : vector<16x32xf32> to vector<16xf32>
    %260 = vector.shape_cast %259 : vector<16xf32> to vector<16x1xf32>
    %c0_50 = arith.constant 0 : index
    %c0_51 = arith.constant 0 : index
    %261 = vector.load %arg6[%c0_50, %c0_51] : memref<1x1xf32, #tpu.memory_space<vmem>>, vector<1x1xf32>
    %262 = vector.broadcast %261 : vector<1x1xf32> to vector<16x1xf32>
    %263 = arith.addf %260, %262 : vector<16x1xf32>
    %c0_52 = arith.constant 0 : index
    %c0_53 = arith.constant 0 : index
    %264 = vector.load %arg7[%c0_52, %c0_53] : memref<16x1xf32, #tpu.memory_space<vmem>>, vector<16x1xf32>
    tpu.vector_store %arg7[%c0_52, %c0_53], %263 {strides = array<i32>} : memref<16x1xf32, #tpu.memory_space<vmem>>, vector<16x1xf32>,
    return
  }
}

</mosaic_0001>

<bundles_post_ra>
// kernel: gaze_text_encoder.1
= control target key start
LH: loop header
LB: loop body
LE: loop exit
PB: predicated region body
PF: predicated region fallthrough
CT: control target
= control target key end

     0   :  { %v2026_v3 = vmov 0.0   ;;  %v2027_v4 = vmov 1   ;;  %v2028_v9 = vmov 0   ;;  %v2029_v29 = vmov 2   ;;  %s2394_s2 = inlined_call_operand.vmem [shape: f32[64,256], index: 2, kind: input, shape index: {}]   ;;  %s2395_s0 = inlined_call_operand.vmem [shape: f32[2,8,5], index: 0, kind: input, shape index: {}]   ;;  %s2396_s1 = inlined_call_operand.vmem [shape: f32[5,256], index: 1, kind: input, shape index: {}]   ;;  %s2397_s3 = inlined_call_operand.vmem [shape: f32[1,256], index: 3, kind: input, shape index: {}]   ;;  %s2398_s4 = inlined_call_operand.vmem [shape: f32[16,16], index: 4, kind: input, shape index: {}]   ;;  %s2399_s6 = inlined_call_operand.<no memory space> [shape: f32[1,1], index: 6, kind: input, shape index: {}]   ;;  %s2400_s5 = inlined_call_operand.vmem [shape: f32[1,32], index: 5, kind: input, shape index: {}]   ;;  %s2401_s7 = inlined_call_operand.vmem [shape: f32[16,1], index: 7, kind: output, shape index: {}]  }
   0x1   :  { %v167_v0 = vld [vmem:[%s2394_s2 + $0x8] sm:$0xff]  ;;  %v169_v1 = vld [vmem:[%s2394_s2 + $0x18] sm:$0xff]  ;;  %v166_v2 = vld [vmem:[%s2394_s2] sm:$0xff]  ;;  %250 = vmatprep.mubr.f32.mxu0 %v2026_v3  ;;  %1842 = vset.pattern.permute.xlu1 %v2027_v4  ;;  %v2030_v30 = vmov 3   ;;  %v2031_v31 = vmov 4   ;;  %v43_v33 = vlaneseq  ;;  %vm318_vm0 = vcmask 1041409  }
   0x2   :  { %v2084_v5 = vpack.c.bf16 %v169_v1, %v167_v0  ;;  %v168_v6 = vld [vmem:[%s2394_s2 + $0x10] sm:$0xff]  ;;  %v171_v7 = vld [vmem:[%s2394_s2 + $0x28] sm:$0xff]  ;;  %v173_v8 = vld [vmem:[%s2394_s2 + $0x38] sm:$0xff]  ;;  %1841 = vset.pattern.permute.xlu0 %v2028_v9  ;;  %388 = vmatprep.mubr.f32.mxu1 %v2026_v3  ;;  %vm182_vm1 = vcmask 523264   ;;  %vm1337_vm2 = vcmask 1043459   ;;  %vm1342_vm3 = vcmask 1045509  }
   0x3   :  { %v2096_v10 = vpack.c.bf16 %v168_v6, %v166_v2  ;;  %v2098_v11 = vpack.c.bf16 %v173_v8, %v171_v7  ;;  %v170_v12 = vld [vmem:[%s2394_s2 + $0x20] sm:$0xff]  ;;  %v172_v13 = vld [vmem:[%s2394_s2 + $0x30] sm:$0xff]  ;;  %v175_v14 = vld [vmem:[%s2394_s2 + $0x48] sm:$0xff]  ;;  %v44_v34 = vshrl.u32 %v43_v33, 7  ;;  %vm1364_vm4 = vcmask 1041408  }
   0x4   :  { %1696 = vmatprep.subr.bf16.mxu0 %v2084_v5  ;;  %v177_v15 = vld [vmem:[%s2394_s2 + $0x58] sm:$0xff]  ;;  %1712 = vmatprep.subr.bf16.mxu1 %v2084_v5  ;;  %v2115_v16 = vpack.c.bf16 %v172_v13, %v170_v12  ;;  %v174_v18 = vld [vmem:[%s2394_s2 + $0x40] sm:$0xff]  ;;  %v176_v19 = vld [vmem:[%s2394_s2 + $0x50] sm:$0xff]  ;;  %vm1366_vm5 = vcmask 1043456   ;;  %vm1347_vm6 = vcmask 1047559   ;;  %vm1368_vm7 = vcmask 1045504  }
   0x5   :  { %1698 = vmatpush1.bf16.msra.mxu0 %v2096_v10  ;;  %1714 = vmatpush1.bf16.msra.mxu1 %v2096_v10  ;;  %v2119_v17 = vpack.c.bf16 %v177_v15, %v175_v14  ;;  %v29_v20 = vld [vmem:[%s2395_s0 + $0x8] sm:$0xff]  ;;  %v181_v22 = vld [vmem:[%s2394_s2 + $0x78] sm:$0xff]  ;;  %v28_v23 = vld [vmem:[%s2395_s0] sm:$0xff]  ;;  %v2141_v24 = vpack.c.bf16 %v176_v19, %v174_v18  ;;  %v45_v37 = vsub.s32 0, %v44_v34  ;;  %v62_v41 = vsub.s32 1, %v44_v34 }
   0x6   :  { %1700 = vmatprep.subr.bf16.mxu0 %v2098_v11  ;;  %1716 = vmatprep.subr.bf16.mxu1 %v2098_v11  ;;  %v179_v21 = vld [vmem:[%s2394_s2 + $0x68] sm:$0xff]  ;;  %v178_v26 = vld [vmem:[%s2394_s2 + $0x60] sm:$0xff]  ;;  %v180_v27 = vld [vmem:[%s2394_s2 + $0x70] sm:$0xff]  ;;  %v104_v48 = vsub.s32 2, %v44_v34  ;;  %v128_v60 = vsub.s32 3, %v44_v34  ;;  %v152_v12 = vsub.s32 4, %v44_v34 }
   0x7   :  { %75 = vperm.xlu1 %1842, %v29_v20   ;;  %40 = vperm.xlu0 %1841, %v29_v20   ;;  %v2145_v25 = vpack.c.bf16 %v181_v22, %v179_v21  ;;  %v2155_v28 = vpack.c.bf16 %v180_v27, %v178_v26  ;;  %v30_v38 = vld [vmem:[%s2396_s1] sm:$0x1f]  ;;  %v31_v39 = vld [vmem:[%s2396_s1 + $0x8] sm:$0x1f]  ;;  %s2032_s1 = smov 64   ;;  %vm1383_vm8 = vcmask 261120  }
   0x8   :  { %v46_v42 = vrot.slane %v30_v38, %v45_v37  ;;  %v32_v43 = vld [vmem:[%s2397_s3] sm:$0x3]  ;;  %v50_v44 = vrot.slane %v31_v39, %v45_v37  ;;  %v81_v46 = vrot.slane %v30_v38, %v62_v41  ;;  %v85_v50 = vrot.slane %v31_v39, %v62_v41  ;;  %s2033_s3 = smov 32   ;;  %vm1824_vm9 = vmpackc.low %vm1383_vm8, %vm1383_vm8 }
   0x9   :  { %1702 = vmatpush1.bf16.msra.mxu0 %v2115_v16  ;;  %1718 = vmatpush1.bf16.msra.mxu1 %v2115_v16  ;;  %v59_v47 = vrot.slane %v32_v43, %v45_v37  ;;  %v63_v51 = vrot.slane %v32_v43, %v62_v41  ;;  %v105_v58 = vrot.slane %v30_v38, %v104_v48  ;;  %vm1473_vm10 = vcmask 130048  }
   0xa   :  { %1704 = vmatprep.subr.bf16.mxu0 %v2119_v17  ;;  %1720 = vmatprep.subr.bf16.mxu1 %v2119_v17  ;;  %v109_v62 = vrot.slane %v31_v39, %v104_v48  ;;  %v129_v9 = vrot.slane %v30_v38, %v128_v60  ;;  %v133_v15 = vrot.slane %v31_v39, %v128_v60  ;;  %vm1603_vm11 = vcmask 7168  }
   0xb   :  { %71 = vperm.xlu1 %1842, %v28_v23   ;;  %35 = vperm.xlu0 %1841, %v28_v23  }
   0xd   :  { %1706 = vmatpush1.bf16.msra.mxu0 %v2141_v24  ;;  %1722 = vmatpush1.bf16.msra.mxu1 %v2141_v24 }
   0xe   :  { %1708 = vmatprep.subr.bf16.mxu0 %v2145_v25  ;;  %1724 = vmatprep.subr.bf16.mxu1 %v2145_v25 }
   0xf   :  { %1844 = vset.pattern.permute.xlu1 %v2029_v29  ;;  %1843 = vset.pattern.permute.xlu0 %v2029_v29  ;;  %v157_v29 = vrot.slane %v31_v39, %v152_v12 }
  0x10   :  { %95 = vperm.xlu1 %1844, %v28_v23   ;;  %99 = vperm.xlu0 %1843, %v29_v20  }
  0x11   :  { %1710 = vmatpush1.bf16.msra.mxu0 %v2155_v28  ;;  %1726 = vmatpush1.bf16.msra.mxu1 %v2155_v28 }
  0x12   :  { %1728 = vmatprep.subr.bf16.mxu0 %v2084_v5  ;;  %1744 = vmatprep.subr.bf16.mxu1 %v2084_v5 }
  0x14   :  { %251 = vmatmul.mubr.f32.vlgmr.msra.gmra.mrb[0].mxu0 %v2026_v3  ;;  %1845 = vset.pattern.permute.xlu1 %v2030_v30 }
  0x15   :  { %123 = vperm.xlu1 %1845, %v29_v20   ;;  %1846 = vset.pattern.permute.xlu0 %v2030_v30 }
  0x16   :  { %119 = vperm.xlu0 %1846, %v28_v23   ;;  %1730 = vmatpush1.bf16.msra.mxu0 %v2096_v10 }
  0x17   :  { %1732 = vmatprep.subr.bf16.mxu0 %v2098_v11  ;;  %531 = vmatprep.mubr.f32.mxu0 %v2026_v3 }
  0x19   :  { %1847 = vset.pattern.permute.xlu1 %v2031_v31 }
  0x1a   :  { %147 = vperm.xlu1 %1847, %v29_v20   ;;  %1734 = vmatpush1.bf16.msra.mxu0 %v2115_v16 }
  0x1b   :  { %1736 = vmatprep.subr.bf16.mxu0 %v2119_v17  ;;  %1853 = vset.pattern.permute.xlu0 %v2031_v31 }
  0x1e   :  { %143 = vperm.xlu1 %1847, %v28_v23   ;;  %1738 = vmatpush1.bf16.msra.mxu0 %v2141_v24  ;;  %v153_v23 = vrot.slane %v30_v38, %v152_v12 }
  0x1f   :  { %1740 = vmatprep.subr.bf16.mxu0 %v2145_v25 }
  0x22   :  { %1742 = vmatpush1.bf16.msra.mxu0 %v2155_v28 }
  0x23   :  { %1760 = vmatprep.subr.bf16.mxu0 %v2084_v5 }
  0x86   :  { %v76_v32 = vpop.permute.xlu1 %75  ;;  %v41_v36 = vpop.permute.xlu0 %40 }
  0x87   :  { %v53_v54 = vmul.f32 %v46_v42, %v41_v36  ;;  %v54_v55 = vmul.f32 %v50_v44, %v41_v36  ;;  %v88_v0 = vmul.f32 %v81_v46, %v76_v32  ;;  %v89_v2 = vmul.f32 %v85_v50, %v76_v32 }
  0x89   :  { %v68_v1 = vadd.f32 %v59_v47, %v53_v54  ;;  %v69_v4 = vadd.f32 %v63_v51, %v54_v55 }
  0x8a   :  { %v72_v35 = vpop.permute.xlu1 %71  ;;  %v36_v45 = vpop.permute.xlu0 %35 }
  0x8b   :  { %v51_v49 = vmul.f32 %v46_v42, %v36_v45  ;;  %v52_v52 = vmul.f32 %v50_v44, %v36_v45  ;;  %v86_v57 = vmul.f32 %v81_v46, %v72_v35  ;;  %v87_v61 = vmul.f32 %v85_v50, %v72_v35 }
  0x8c   :  { %v92_v19 = vadd.f32 %v88_v0, %v68_v1  ;;  %v93_v21 = vadd.f32 %v89_v2, %v69_v4 }
  0x8d   :  { %v66_v59 = vadd.f32 %v59_v47, %v51_v49  ;;  %v67_v63 = vadd.f32 %v63_v51, %v52_v52 }
  0x8f   :  { %v96_v40 = vpop.permute.xlu1 %95  ;;  %v100_v56 = vpop.permute.xlu0 %99  ;;  %v90_v8 = vadd.f32 %v86_v57, %v66_v59  ;;  %v91_v14 = vadd.f32 %v87_v61, %v67_v63 }
  0x90   :  { %v110_v7 = vmul.f32 %v105_v58, %v96_v40  ;;  %v111_v13 = vmul.f32 %v109_v62, %v96_v40  ;;  %v112_v20 = vmul.f32 %v105_v58, %v100_v56  ;;  %v113_v22 = vmul.f32 %v109_v62, %v100_v56 }
  0x92   :  { %v114_v26 = vadd.f32 %v110_v7, %v90_v8  ;;  %v115_v30 = vadd.f32 %v111_v13, %v91_v14  ;;  %v116_v35 = vadd.f32 %v112_v20, %v92_v19  ;;  %v117_v37 = vadd.f32 %v113_v22, %v93_v21 }
  0x94   :  { %v124_v53 = vpop.permute.xlu1 %123 }
  0x95   :  { %v120_v18 = vpop.permute.xlu0 %119  ;;  %v136_v33 = vmul.f32 %v129_v9, %v124_v53  ;;  %v137_v36 = vmul.f32 %v133_v15, %v124_v53 }
  0x96   :  { %v134_v27 = vmul.f32 %v129_v9, %v120_v18  ;;  %v135_v31 = vmul.f32 %v133_v15, %v120_v18 }
  0x97   :  { %v140_v43 = vadd.f32 %v136_v33, %v116_v35  ;;  %v141_v45 = vadd.f32 %v137_v36, %v117_v37 }
  0x98   :  { %v138_v34 = vadd.f32 %v134_v27, %v114_v26  ;;  %v139_v41 = vadd.f32 %v135_v31, %v115_v30 }
  0x99   :  { %v148_v6 = vpop.permute.xlu1 %147 }
  0x9a   :  { %v160_v44 = vmul.f32 %v153_v23, %v148_v6  ;;  %v161_v46 = vmul.f32 %v157_v29, %v148_v6 }
  0x9c   :  { %v2187_v48 = vadd.f32 %v160_v44, %v140_v43  ;;  %v2190_v52 = vadd.f32 %v161_v46, %v141_v45 }
  0x9d   :  { %v144_v32 = vpop.permute.xlu1 %143 }
  0x9e   :  { %v158_v40 = vmul.f32 %v153_v23, %v144_v32  ;;  %v159_v42 = vmul.f32 %v157_v29, %v144_v32 }
  0xa0   :  { %v2183_v47 = vadd.f32 %v158_v40, %v138_v34  ;;  %v2185_v38 = vadd.f32 %v159_v42, %v139_v41 }
  0xe7   :  { %v252_v39 = vpop.f32.mrb[0].mxu0 }
  0xe8   :  { %v259_v49 = vrot.slane %v252_v39, 1  ;;  %v265_v50 = vadd.f32 %v252_v39, %v2183_v47  ;;  %v254_v51 = vpop.f32.mrb[1].mxu0 }
  0xe9   :  { %v260_v53 = vrot.slane %v254_v51, 1  ;;  %v266_v54 = vadd.f32 %v254_v51, %v2185_v38 }
  0xea   :  { %v267_v55 = vadd.f32 %v259_v49, %v2187_v48  ;;  %v1610_v56 = vmul.f32 -1.442695, %v265_v50 }
  0xeb   :  { %v268_v57 = vadd.f32 %v260_v53, %v2190_v52  ;;  %v1611_v58 = vmul.f32 -1.442695, %v266_v54 }
  0xec   :  { %1854 = vpow2.f32 %v1610_v56  ;;  %v1612_v59 = vmul.f32 -1.442695, %v267_v55 }
  0xed   :  { %1856 = vpow2.f32 %v1611_v58  ;;  %v1613_v60 = vmul.f32 -1.442695, %v268_v57 }
  0xee   :  { %1858 = vpow2.f32 %v1612_v59 }
  0xef   :  { %1860 = vpow2.f32 %v1613_v60 }
  0xf6   :  { %v1855_v61 = vpop.eup %1854 }
  0xf7   :  { %v1857_v62 = vpop.eup %1856  ;;  %v281_v2 = vadd.f32 1.0, %v1855_v61 }
  0xf8   :  { %v1859_v63 = vpop.eup %1858  ;;  %v282_v0 = vadd.f32 1.0, %v1857_v62 }
  0xf9   :  { %v1861_v1 = vpop.eup %1860  ;;  %v283_v6 = vadd.f32 1.0, %v1859_v63 }
  0xfa   :  { %v284_v4 = vadd.f32 1.0, %v1861_v1  ;;  %1862 = vrcp.f32 %v282_v0 }
  0xfc   :  { %1864 = vrcp.f32 %v284_v4 }
  0xfd   :  { %1866 = vrcp.f32 %v281_v2 }
  0xfe   :  { %1868 = vrcp.f32 %v283_v6 }
 0x104   :  { %v1863_v7 = vpop.eup %1862 }
 0x105   :  { %v293_v8 = vmul.f32 2.0, %v1863_v7 }
 0x106   :  { %v1865_v9 = vpop.eup %1864 }
 0x107   :  { %v1614_v12 = vadd.f32 -1.0, %v293_v8  ;;  %v294_v13 = vmul.f32 2.0, %v1865_v9  ;;  %v1867_v14 = vpop.eup %1866 }
 0x108   :  { %v1869_v19 = vpop.eup %1868  ;;  %v297_v21 = vmul.f32 0.0, %v1867_v14 }
 0x109   :  { %v299_v15 = vmul.f32 %v1867_v14, %v1614_v12  ;;  %v1615_v18 = vadd.f32 -1.0, %v294_v13  ;;  %v298_v26 = vmul.f32 0.0, %v1869_v19 }
 0x10b   :  { %303 = vrot.lane.b32.xlu1 %v299_v15, %s2032_s1  ;;  %v300_v20 = vmul.f32 %v1869_v19, %v1615_v18 }
 0x10d   :  { %305 = vrot.lane.b32.xlu0 %v300_v20, %s2032_s1 }
 0x17d   :  { %v304_v22 = vpop.permute.xlu1 %303 }
 0x17e   :  { %v2197_v23 = vadd.f32 %v304_v22, %v297_v21 }
 0x17f   :  { %v306_v27 = vpop.permute.xlu0 %305 }
 0x180   :  { %v310_v29 = vadd.f32 %v306_v27, %v298_v26  ;;  %1870 = vtanh.f32 %v2197_v23  ;;  %v437_v0 = vrot.slane %v2197_v23, 7 }
 0x182   :  { %1872 = vtanh.f32 %v310_v29  ;;  %v438_v61 = vrot.slane %v310_v29, 7 }
 0x18a   :  { %v1871_v30 = vpop.eup %1870 }
 0x18b   :  { %v313_v33 = vmul.f32 %v1871_v30, %v1863_v7 }
 0x18c   :  { %v1873_v31 = vpop.eup %1872 }
 0x18d   :  { %v314_v32 = vmul.f32 %v1873_v31, %v1865_v9 }
 0x18f   :  { %v317_v35 = vrot.slane %v314_v32, 7 }
 0x191   :  { %v2201_v36 = vsel %vm318_vm0, %v317_v35, %v313_v33 }
 0x192   :  { %320 = vrot.lane.b32.xlu0 %v2201_v36, %s2032_s1 }
 0x204   :  { %v321_v37 = vpop.permute.xlu0 %320 }
 0x205   :  { %1616 = vmatmul.mubr.msk.f32.vlgmr.msra.gmra.mrb[0].mxu1 %vm182_vm1, %v321_v37 }
 0x206   :  { %1746 = vmatpush1.bf16.msra.mxu1 %v2096_v10  ;;  %677 = vmatprep.mubr.f32.mxu1 %v2026_v3 }
 0x207   :  { %1748 = vmatprep.subr.bf16.mxu1 %v2098_v11 }
 0x20a   :  { %1750 = vmatpush1.bf16.msra.mxu1 %v2115_v16 }
 0x20b   :  { %1752 = vmatprep.subr.bf16.mxu1 %v2119_v17 }
 0x20e   :  { %1754 = vmatpush1.bf16.msra.mxu1 %v2141_v24 }
 0x20f   :  { %1756 = vmatprep.subr.bf16.mxu1 %v2145_v25 }
 0x212   :  { %1758 = vmatpush1.bf16.msra.mxu1 %v2155_v28 }
 0x213   :  { %1776 = vmatprep.subr.bf16.mxu1 %v2084_v5 }
 0x2d8   :  { %v390_v34 = vpop.f32.mrb[0].mxu1 }
 0x2d9   :  { %v397_v40 = vrot.slane %v390_v34, 7  ;;  %v405_v41 = vadd.f32 %v390_v34, %v2187_v48  ;;  %v392_v42 = vpop.f32.mrb[1].mxu1 }
 0x2da   :  { %v398_v43 = vrot.slane %v392_v42, 7  ;;  %v406_v44 = vadd.f32 %v392_v42, %v2190_v52 }
 0x2db   :  { %v403_v45 = vadd.f32 %v397_v40, %v2183_v47  ;;  %v1619_v46 = vmul.f32 -1.442695, %v405_v41 }
 0x2dc   :  { %v404_v39 = vadd.f32 %v398_v43, %v2185_v38  ;;  %v1620_v49 = vmul.f32 -1.442695, %v406_v44 }
 0x2dd   :  { %v1617_v50 = vmul.f32 -1.442695, %v403_v45  ;;  %1874 = vpow2.f32 %v1619_v46 }
 0x2de   :  { %v1618_v51 = vmul.f32 -1.442695, %v404_v39  ;;  %1876 = vpow2.f32 %v1620_v49 }
 0x2df   :  { %1878 = vpow2.f32 %v1617_v50 }
 0x2e0   :  { %1880 = vpow2.f32 %v1618_v51 }
 0x2e7   :  { %v1875_v53 = vpop.eup %1874 }
 0x2e8   :  { %v1877_v54 = vpop.eup %1876  ;;  %v421_v55 = vadd.f32 1.0, %v1875_v53 }
 0x2e9   :  { %v1879_v56 = vpop.eup %1878  ;;  %v422_v57 = vadd.f32 1.0, %v1877_v54 }
 0x2ea   :  { %v1881_v58 = vpop.eup %1880  ;;  %v419_v59 = vadd.f32 1.0, %v1879_v56  ;;  %1882 = vrcp.f32 %v421_v55 }
 0x2eb   :  { %v420_v60 = vadd.f32 1.0, %v1881_v58  ;;  %1884 = vrcp.f32 %v422_v57 }
 0x2ec   :  { %1886 = vrcp.f32 %v419_v59 }
 0x2ed   :  { %1888 = vrcp.f32 %v420_v60 }
 0x2f4   :  { %v1883_v62 = vpop.eup %1882 }
 0x2f5   :  { %v1885_v63 = vpop.eup %1884  ;;  %v442_v1 = vmul.f32 %v1883_v62, %v438_v61 }
 0x2f6   :  { %v1887_v2 = vpop.eup %1886  ;;  %v432_v4 = vmul.f32 2.0, %v1885_v63 }
 0x2f7   :  { %v1889_v6 = vpop.eup %1888  ;;  %v441_v7 = vmul.f32 %v1887_v2, %v437_v0 }
 0x2f8   :  { %v1622_v8 = vadd.f32 -1.0, %v432_v4  ;;  %v431_v9 = vmul.f32 2.0, %v1889_v6 }
 0x2fa   :  { %v444_v12 = vmul.f32 %v1883_v62, %v1622_v8  ;;  %v1621_v13 = vadd.f32 -1.0, %v431_v9 }
 0x2fc   :  { %449 = vrot.lane.b32.xlu0 %v444_v12, %s2032_s1  ;;  %v443_v14 = vmul.f32 %v1887_v2, %v1621_v13 }
 0x2fe   :  { %447 = vrot.lane.b32.xlu1 %v443_v14, %s2032_s1 }
 0x36e   :  { %v450_v15 = vpop.permute.xlu0 %449 }
 0x36f   :  { %v2222_v18 = vadd.f32 %v450_v15, %v442_v1 }
 0x370   :  { %v448_v19 = vpop.permute.xlu1 %447 }
 0x371   :  { %1890 = vtanh.f32 %v2222_v18  ;;  %v453_v20 = vadd.f32 %v448_v19, %v441_v7 }
 0x373   :  { %1892 = vtanh.f32 %v453_v20  ;;  %v582_v61 = vrot.slane %v453_v20, 7 }
 0x37b   :  { %v1891_v21 = vpop.eup %1890 }
 0x37c   :  { %v458_v22 = vmul.f32 %v1891_v21, %v1885_v63  ;;  %v583_v63 = vrot.slane %v2222_v18, 7 }
 0x37d   :  { %v1893_v23 = vpop.eup %1892 }
 0x37e   :  { %v457_v26 = vmul.f32 %v1893_v23, %v1889_v6  ;;  %v1336_v30 = vrot.slane %v458_v22, 6 }
 0x380   :  { %v461_v27 = vrot.slane %v457_v26, 1  ;;  %v1335_v29 = vrot.slane %v457_v26, 7 }
 0x382   :  { %v462_v31 = vsel %vm318_vm0, %v458_v22, %v461_v27  ;;  %v2227_v32 = vsel %vm1337_vm2, %v1336_v30, %v1335_v29 }
 0x383   :  { %463 = vrot.lane.b32.xlu1 %v462_v31, %s2032_s1 }
 0x3f5   :  { %v464_v33 = vpop.permute.xlu1 %463 }
 0x3f6   :  { %1623 = vmatmul.mubr.msk.f32.vlgmr.msra.gmra.mrb[2].mxu0 %vm182_vm1, %v464_v33 }
 0x3f7   :  { %1762 = vmatpush1.bf16.msra.mxu0 %v2096_v10  ;;  %823 = vmatprep.mubr.f32.mxu0 %v2026_v3 }
 0x3f8   :  { %1764 = vmatprep.subr.bf16.mxu0 %v2098_v11 }
 0x3fb   :  { %1766 = vmatpush1.bf16.msra.mxu0 %v2115_v16 }
 0x3fc   :  { %1768 = vmatprep.subr.bf16.mxu0 %v2119_v17 }
 0x3ff   :  { %1770 = vmatpush1.bf16.msra.mxu0 %v2141_v24 }
 0x400   :  { %1772 = vmatprep.subr.bf16.mxu0 %v2145_v25 }
 0x403   :  { %1774 = vmatpush1.bf16.msra.mxu0 %v2155_v28 }
 0x404   :  { %1792 = vmatprep.subr.bf16.mxu0 %v2084_v5 }
 0x4c9   :  { %v533_v35 = vpop.f32.mrb[2].mxu0 }
 0x4ca   :  { %v540_v37 = vrot.slane %v533_v35, 6  ;;  %v542_v34 = vrot.slane %v533_v35, 7  ;;  %v535_v40 = vpop.f32.mrb[3].mxu0 }
 0x4cb   :  { %v541_v41 = vrot.slane %v535_v40, 6  ;;  %v543_v42 = vrot.slane %v535_v40, 7 }
 0x4cc   :  { %v548_v43 = vadd.f32 %v540_v37, %v2183_v47  ;;  %v550_v44 = vadd.f32 %v542_v34, %v2187_v48  ;;  %v1365_v37 = vsel %vm1364_vm4, %v2201_v36, %v2227_v32 }
 0x4cd   :  { %v549_v45 = vadd.f32 %v541_v41, %v2185_v38  ;;  %v551_v46 = vadd.f32 %v543_v42, %v2190_v52 }
 0x4ce   :  { %v1624_v39 = vmul.f32 -1.442695, %v548_v43  ;;  %v1626_v49 = vmul.f32 -1.442695, %v550_v44 }
 0x4cf   :  { %v1625_v50 = vmul.f32 -1.442695, %v549_v45  ;;  %v1627_v51 = vmul.f32 -1.442695, %v551_v46 }
 0x4d0   :  { %1894 = vpow2.f32 %v1624_v39 }
 0x4d1   :  { %1896 = vpow2.f32 %v1626_v49 }
 0x4d2   :  { %1898 = vpow2.f32 %v1625_v50 }
 0x4d3   :  { %1900 = vpow2.f32 %v1627_v51 }
 0x4da   :  { %v1895_v53 = vpop.eup %1894 }
 0x4db   :  { %v1897_v54 = vpop.eup %1896  ;;  %v564_v55 = vadd.f32 1.0, %v1895_v53 }
 0x4dc   :  { %v1899_v56 = vpop.eup %1898  ;;  %v566_v57 = vadd.f32 1.0, %v1897_v54 }
 0x4dd   :  { %v1901_v58 = vpop.eup %1900  ;;  %1902 = vrcp.f32 %v564_v55  ;;  %v565_v59 = vadd.f32 1.0, %v1899_v56 }
 0x4de   :  { %1904 = vrcp.f32 %v566_v57  ;;  %v567_v60 = vadd.f32 1.0, %v1901_v58 }
 0x4df   :  { %1906 = vrcp.f32 %v565_v59 }
 0x4e0   :  { %1908 = vrcp.f32 %v567_v60 }
 0x4e7   :  { %v1903_v62 = vpop.eup %1902 }
 0x4e8   :  { %v1905_v0 = vpop.eup %1904  ;;  %v586_v1 = vmul.f32 %v1903_v62, %v582_v61 }
 0x4e9   :  { %v1907_v2 = vpop.eup %1906  ;;  %v587_v4 = vmul.f32 %v1905_v0, %v583_v63 }
 0x4ea   :  { %v1909_v6 = vpop.eup %1908  ;;  %v576_v7 = vmul.f32 2.0, %v1907_v2 }
 0x4eb   :  { %v577_v8 = vmul.f32 2.0, %v1909_v6 }
 0x4ec   :  { %v1628_v9 = vadd.f32 -1.0, %v576_v7 }
 0x4ed   :  { %v1629_v12 = vadd.f32 -1.0, %v577_v8 }
 0x4ee   :  { %v588_v13 = vmul.f32 %v1903_v62, %v1628_v9 }
 0x4ef   :  { %v589_v14 = vmul.f32 %v1905_v0, %v1629_v12 }
 0x4f0   :  { %592 = vrot.lane.b32.xlu0 %v588_v13, %s2032_s1 }
 0x4f1   :  { %594 = vrot.lane.b32.xlu1 %v589_v14, %s2032_s1 }
 0x562   :  { %v593_v15 = vpop.permute.xlu0 %592 }
 0x563   :  { %v595_v19 = vpop.permute.xlu1 %594  ;;  %v2247_v20 = vadd.f32 %v593_v15, %v586_v1 }
 0x564   :  { %v2249_v18 = vadd.f32 %v595_v19, %v587_v4 }
 0x565   :  { %1910 = vtanh.f32 %v2247_v20  ;;  %v728_v62 = vrot.slane %v2247_v20, 7 }
 0x566   :  { %1912 = vtanh.f32 %v2249_v18  ;;  %v729_v0 = vrot.slane %v2249_v18, 7 }
 0x56f   :  { %v1911_v21 = vpop.eup %1910 }
 0x570   :  { %v1913_v22 = vpop.eup %1912  ;;  %v602_v23 = vmul.f32 %v1911_v21, %v1907_v2 }
 0x571   :  { %v603_v26 = vmul.f32 %v1913_v22, %v1909_v6 }
 0x572   :  { %v606_v27 = vrot.slane %v602_v23, 2  ;;  %v1340_v29 = vrot.slane %v602_v23, 6 }
 0x573   :  { %v607_v30 = vrot.slane %v603_v26, 1  ;;  %v1341_v31 = vrot.slane %v603_v26, 5 }
 0x575   :  { %v608_v33 = vsel %vm318_vm0, %v607_v30, %v606_v27  ;;  %v1343_v35 = vsel %vm1342_vm3, %v1341_v31, %v1340_v29 }
 0x576   :  { %609 = vrot.lane.b32.xlu0 %v608_v33, %s2032_s1  ;;  %v2260_v34 = vsel %vm1366_vm5, %v1365_v37, %v1343_v35 }
 0x5e8   :  { %v610_v40 = vpop.permute.xlu0 %609 }
 0x5e9   :  { %1630 = vmatmul.mubr.msk.f32.vlgmr.msra.gmra.mrb[2].mxu1 %vm182_vm1, %v610_v40 }
 0x5ea   :  { %1778 = vmatpush1.bf16.msra.mxu1 %v2096_v10  ;;  %969 = vmatprep.mubr.f32.mxu1 %v2026_v3 }
 0x5eb   :  { %1780 = vmatprep.subr.bf16.mxu1 %v2098_v11 }
 0x5ee   :  { %1782 = vmatpush1.bf16.msra.mxu1 %v2115_v16 }
 0x5ef   :  { %1784 = vmatprep.subr.bf16.mxu1 %v2119_v17 }
 0x5f2   :  { %1786 = vmatpush1.bf16.msra.mxu1 %v2141_v24 }
 0x5f3   :  { %1788 = vmatprep.subr.bf16.mxu1 %v2145_v25 }
 0x5f6   :  { %1790 = vmatpush1.bf16.msra.mxu1 %v2155_v28 }
 0x5f7   :  { %1808 = vmatprep.subr.bf16.mxu1 %v2084_v5 }
 0x6bc   :  { %v679_v36 = vpop.f32.mrb[2].mxu1 }
 0x6bd   :  { %v686_v32 = vrot.slane %v679_v36, 5  ;;  %v688_v41 = vrot.slane %v679_v36, 6  ;;  %v681_v42 = vpop.f32.mrb[3].mxu1 }
 0x6be   :  { %v687_v43 = vrot.slane %v681_v42, 5  ;;  %v689_v44 = vrot.slane %v681_v42, 6 }
 0x6bf   :  { %v694_v45 = vadd.f32 %v686_v32, %v2183_v47  ;;  %v696_v46 = vadd.f32 %v688_v41, %v2187_v48 }
 0x6c0   :  { %v695_v39 = vadd.f32 %v687_v43, %v2185_v38  ;;  %v697_v49 = vadd.f32 %v689_v44, %v2190_v52 }
 0x6c1   :  { %v1631_v50 = vmul.f32 -1.442695, %v694_v45  ;;  %v1633_v51 = vmul.f32 -1.442695, %v696_v46 }
 0x6c2   :  { %v1632_v53 = vmul.f32 -1.442695, %v695_v39  ;;  %v1634_v54 = vmul.f32 -1.442695, %v697_v49 }
 0x6c3   :  { %1914 = vpow2.f32 %v1631_v50 }
 0x6c4   :  { %1916 = vpow2.f32 %v1633_v51 }
 0x6c5   :  { %1918 = vpow2.f32 %v1632_v53 }
 0x6c6   :  { %1920 = vpow2.f32 %v1634_v54 }
 0x6cd   :  { %v1915_v5 = vpop.eup %1914 }
 0x6ce   :  { %v1917_v55 = vpop.eup %1916  ;;  %v710_v56 = vadd.f32 1.0, %v1915_v5 }
 0x6cf   :  { %v1919_v57 = vpop.eup %1918  ;;  %v712_v58 = vadd.f32 1.0, %v1917_v55 }
 0x6d0   :  { %v1921_v59 = vpop.eup %1920  ;;  %1922 = vrcp.f32 %v710_v56  ;;  %v711_v60 = vadd.f32 1.0, %v1919_v57 }
 0x6d1   :  { %1924 = vrcp.f32 %v712_v58  ;;  %v713_v61 = vadd.f32 1.0, %v1921_v59 }
 0x6d2   :  { %1926 = vrcp.f32 %v711_v60 }
 0x6d3   :  { %1928 = vrcp.f32 %v713_v61 }
 0x6da   :  { %v1923_v63 = vpop.eup %1922 }
 0x6db   :  { %v1925_v1 = vpop.eup %1924  ;;  %v732_v2 = vmul.f32 %v1923_v63, %v728_v62 }
 0x6dc   :  { %v1927_v4 = vpop.eup %1926  ;;  %v733_v6 = vmul.f32 %v1925_v1, %v729_v0 }
 0x6dd   :  { %v1929_v7 = vpop.eup %1928  ;;  %v722_v8 = vmul.f32 2.0, %v1927_v4 }
 0x6de   :  { %v723_v9 = vmul.f32 2.0, %v1929_v7 }
 0x6df   :  { %v1635_v12 = vadd.f32 -1.0, %v722_v8 }
 0x6e0   :  { %v1636_v13 = vadd.f32 -1.0, %v723_v9 }
 0x6e1   :  { %v734_v14 = vmul.f32 %v1923_v63, %v1635_v12 }
 0x6e2   :  { %v735_v15 = vmul.f32 %v1925_v1, %v1636_v13 }
 0x6e3   :  { %738 = vrot.lane.b32.xlu1 %v734_v14, %s2032_s1 }
 0x6e4   :  { %740 = vrot.lane.b32.xlu0 %v735_v15, %s2032_s1 }
 0x755   :  { %v739_v19 = vpop.permute.xlu1 %738 }
 0x756   :  { %v741_v20 = vpop.permute.xlu0 %740  ;;  %v2280_v21 = vadd.f32 %v739_v19, %v732_v2 }
 0x757   :  { %v2282_v18 = vadd.f32 %v741_v20, %v733_v6 }
 0x758   :  { %1930 = vtanh.f32 %v2280_v21  ;;  %v874_v62 = vrot.slane %v2280_v21, 7 }
 0x759   :  { %1932 = vtanh.f32 %v2282_v18  ;;  %v875_v0 = vrot.slane %v2282_v18, 7 }
 0x762   :  { %v1931_v22 = vpop.eup %1930 }
 0x763   :  { %v1933_v23 = vpop.eup %1932  ;;  %v748_v26 = vmul.f32 %v1931_v22, %v1927_v4 }
 0x764   :  { %v749_v27 = vmul.f32 %v1933_v23, %v1929_v7 }
 0x765   :  { %v752_v29 = vrot.slane %v748_v26, 3  ;;  %v1345_v30 = vrot.slane %v748_v26, 5 }
 0x766   :  { %v753_v31 = vrot.slane %v749_v27, 2  ;;  %v1346_v33 = vrot.slane %v749_v27, 4 }
 0x768   :  { %v754_v35 = vsel %vm318_vm0, %v753_v31, %v752_v29  ;;  %v1348_v37 = vsel %vm1347_vm6, %v1346_v33, %v1345_v30 }
 0x769   :  { %755 = vrot.lane.b32.xlu1 %v754_v35, %s2032_s1  ;;  %v2291_v40 = vsel %vm1368_vm7, %v2260_v34, %v1348_v37 }
 0x7db   :  { %v756_v36 = vpop.permute.xlu1 %755 }
 0x7dc   :  { %1637 = vmatmul.mubr.msk.f32.vlgmr.msra.gmra.mrb[4].mxu0 %vm182_vm1, %v756_v36 }
 0x7dd   :  { %1794 = vmatpush1.bf16.msra.mxu0 %v2096_v10  ;;  %1115 = vmatprep.mubr.f32.mxu0 %v2026_v3 }
 0x7de   :  { %1796 = vmatprep.subr.bf16.mxu0 %v2098_v11 }
 0x7e1   :  { %1798 = vmatpush1.bf16.msra.mxu0 %v2115_v16 }
 0x7e2   :  { %1800 = vmatprep.subr.bf16.mxu0 %v2119_v17 }
 0x7e5   :  { %1802 = vmatpush1.bf16.msra.mxu0 %v2141_v24 }
 0x7e6   :  { %1804 = vmatprep.subr.bf16.mxu0 %v2145_v25 }
 0x7e9   :  { %1806 = vmatpush1.bf16.msra.mxu0 %v2155_v28 }
 0x8af   :  { %v825_v34 = vpop.f32.mrb[4].mxu0 }
 0x8b0   :  { %v832_v32 = vrot.slane %v825_v34, 4  ;;  %v834_v41 = vrot.slane %v825_v34, 5  ;;  %v827_v42 = vpop.f32.mrb[5].mxu0 }
 0x8b1   :  { %v833_v43 = vrot.slane %v827_v42, 4  ;;  %v835_v44 = vrot.slane %v827_v42, 5 }
 0x8b2   :  { %v840_v45 = vadd.f32 %v832_v32, %v2183_v47  ;;  %v842_v46 = vadd.f32 %v834_v41, %v2187_v48 }
 0x8b3   :  { %v841_v39 = vadd.f32 %v833_v43, %v2185_v38  ;;  %v843_v49 = vadd.f32 %v835_v44, %v2190_v52 }
 0x8b4   :  { %v1638_v50 = vmul.f32 -1.442695, %v840_v45  ;;  %v1640_v51 = vmul.f32 -1.442695, %v842_v46 }
 0x8b5   :  { %v1639_v53 = vmul.f32 -1.442695, %v841_v39  ;;  %v1641_v54 = vmul.f32 -1.442695, %v843_v49 }
 0x8b6   :  { %1934 = vpow2.f32 %v1638_v50 }
 0x8b7   :  { %1936 = vpow2.f32 %v1640_v51 }
 0x8b8   :  { %1938 = vpow2.f32 %v1639_v53 }
 0x8b9   :  { %1940 = vpow2.f32 %v1641_v54 }
 0x8c0   :  { %v1935_v5 = vpop.eup %1934 }
 0x8c1   :  { %v1937_v55 = vpop.eup %1936  ;;  %v856_v56 = vadd.f32 1.0, %v1935_v5 }
 0x8c2   :  { %v1939_v57 = vpop.eup %1938  ;;  %v858_v58 = vadd.f32 1.0, %v1937_v55 }
 0x8c3   :  { %v1941_v59 = vpop.eup %1940  ;;  %1942 = vrcp.f32 %v856_v56  ;;  %v857_v60 = vadd.f32 1.0, %v1939_v57 }
 0x8c4   :  { %1944 = vrcp.f32 %v858_v58  ;;  %v859_v61 = vadd.f32 1.0, %v1941_v59 }
 0x8c5   :  { %1946 = vrcp.f32 %v857_v60 }
 0x8c6   :  { %1948 = vrcp.f32 %v859_v61 }
 0x8cd   :  { %v1943_v63 = vpop.eup %1942 }
 0x8ce   :  { %v1945_v1 = vpop.eup %1944  ;;  %v878_v2 = vmul.f32 %v1943_v63, %v874_v62 }
 0x8cf   :  { %v1947_v4 = vpop.eup %1946  ;;  %v879_v6 = vmul.f32 %v1945_v1, %v875_v0 }
 0x8d0   :  { %v1949_v7 = vpop.eup %1948  ;;  %v868_v8 = vmul.f32 2.0, %v1947_v4 }
 0x8d1   :  { %v869_v9 = vmul.f32 2.0, %v1949_v7 }
 0x8d2   :  { %v1642_v12 = vadd.f32 -1.0, %v868_v8 }
 0x8d3   :  { %v1643_v13 = vadd.f32 -1.0, %v869_v9 }
 0x8d4   :  { %v880_v14 = vmul.f32 %v1943_v63, %v1642_v12 }
 0x8d5   :  { %v881_v15 = vmul.f32 %v1945_v1, %v1643_v13 }
 0x8d6   :  { %884 = vrot.lane.b32.xlu0 %v880_v14, %s2032_s1 }
 0x8d7   :  { %886 = vrot.lane.b32.xlu1 %v881_v15, %s2032_s1 }
 0x948   :  { %v885_v19 = vpop.permute.xlu0 %884 }
 0x949   :  { %v887_v20 = vpop.permute.xlu1 %886  ;;  %v890_v21 = vadd.f32 %v885_v19, %v878_v2 }
 0x94a   :  { %v891_v22 = vadd.f32 %v887_v20, %v879_v6 }
 0x94b   :  { %1950 = vtanh.f32 %v890_v21  ;;  %v1020_v51 = vrot.slane %v890_v21, 7 }
 0x94c   :  { %1952 = vtanh.f32 %v891_v22  ;;  %v1021_v54 = vrot.slane %v891_v22, 7 }
 0x955   :  { %v1951_v18 = vpop.eup %1950 }
 0x956   :  { %v1953_v23 = vpop.eup %1952  ;;  %v894_v26 = vmul.f32 %v1951_v18, %v1947_v4 }
 0x957   :  { %v895_v27 = vmul.f32 %v1953_v23, %v1949_v7 }
 0x958   :  { %v898_v29 = vrot.slane %v894_v26, 4 }
 0x959   :  { %v899_v30 = vrot.slane %v895_v27, 3 }
 0x95b   :  { %v2311_v31 = vsel %vm318_vm0, %v899_v30, %v898_v29 }
 0x95c   :  { %901 = vrot.lane.b32.xlu0 %v2311_v31, %s2032_s1 }
 0x9ce   :  { %v902_v33 = vpop.permute.xlu0 %901 }
 0x9cf   :  { %1644 = vmatmul.mubr.msk.f32.vlgmr.msra.gmra.mrb[4].mxu1 %vm182_vm1, %v902_v33 }
 0x9d0   :  { %1810 = vmatpush1.bf16.msra.mxu1 %v2096_v10  ;;  %1261 = vmatprep.mubr.f32.mxu1 %v2026_v3 }
 0x9d1   :  { %1812 = vmatprep.subr.bf16.mxu1 %v2098_v11 }
 0x9d4   :  { %1814 = vmatpush1.bf16.msra.mxu1 %v2115_v16 }
 0x9d5   :  { %1816 = vmatprep.subr.bf16.mxu1 %v2119_v17 }
 0x9d8   :  { %1818 = vmatpush1.bf16.msra.mxu1 %v2141_v24 }
 0x9d9   :  { %1820 = vmatprep.subr.bf16.mxu1 %v2145_v25 }
 0x9dc   :  { %1822 = vmatpush1.bf16.msra.mxu1 %v2155_v28 }
 0xaa2   :  { %v971_v35 = vpop.f32.mrb[4].mxu1 }
 0xaa3   :  { %v978_v37 = vrot.slane %v971_v35, 3  ;;  %v980_v36 = vrot.slane %v971_v35, 4  ;;  %v973_v34 = vpop.f32.mrb[5].mxu1 }
 0xaa4   :  { %v979_v32 = vrot.slane %v973_v34, 3  ;;  %v981_v10 = vrot.slane %v973_v34, 4 }
 0xaa5   :  { %v986_v3 = vadd.f32 %v978_v37, %v2183_v47  ;;  %v988_v11 = vadd.f32 %v980_v36, %v2187_v48 }
 0xaa6   :  { %v987_v16 = vadd.f32 %v979_v32, %v2185_v38  ;;  %v989_v17 = vadd.f32 %v981_v10, %v2190_v52 }
 0xaa7   :  { %v1645_v41 = vmul.f32 -1.442695, %v986_v3  ;;  %v1647_v24 = vmul.f32 -1.442695, %v988_v11 }
 0xaa8   :  { %v1646_v42 = vmul.f32 -1.442695, %v987_v16  ;;  %v1648_v25 = vmul.f32 -1.442695, %v989_v17 }
 0xaa9   :  { %1954 = vpow2.f32 %v1645_v41 }
 0xaaa   :  { %1956 = vpow2.f32 %v1647_v24 }
 0xaab   :  { %1958 = vpow2.f32 %v1646_v42 }
 0xaac   :  { %1960 = vpow2.f32 %v1648_v25 }
 0xab3   :  { %v1955_v28 = vpop.eup %1954 }
 0xab4   :  { %v1957_v43 = vpop.eup %1956  ;;  %v1002_v44 = vadd.f32 1.0, %v1955_v28 }
 0xab5   :  { %v1959_v45 = vpop.eup %1958  ;;  %v1004_v46 = vadd.f32 1.0, %v1957_v43 }
 0xab6   :  { %v1961_v39 = vpop.eup %1960  ;;  %1962 = vrcp.f32 %v1002_v44  ;;  %v1003_v49 = vadd.f32 1.0, %v1959_v45 }
 0xab7   :  { %1964 = vrcp.f32 %v1004_v46  ;;  %v1005_v50 = vadd.f32 1.0, %v1961_v39 }
 0xab8   :  { %1966 = vrcp.f32 %v1003_v49 }
 0xab9   :  { %1968 = vrcp.f32 %v1005_v50 }
 0xac0   :  { %v1963_v53 = vpop.eup %1962 }
 0xac1   :  { %v1965_v5 = vpop.eup %1964  ;;  %v1024_v55 = vmul.f32 %v1963_v53, %v1020_v51 }
 0xac2   :  { %v1967_v56 = vpop.eup %1966  ;;  %v1025_v57 = vmul.f32 %v1965_v5, %v1021_v54 }
 0xac3   :  { %v1969_v58 = vpop.eup %1968  ;;  %v1014_v59 = vmul.f32 2.0, %v1967_v56 }
 0xac4   :  { %v1015_v60 = vmul.f32 2.0, %v1969_v58 }
 0xac5   :  { %v1649_v61 = vadd.f32 -1.0, %v1014_v59 }
 0xac6   :  { %v1650_v62 = vadd.f32 -1.0, %v1015_v60 }
 0xac7   :  { %v1026_v63 = vmul.f32 %v1963_v53, %v1649_v61 }
 0xac8   :  { %v1027_v0 = vmul.f32 %v1965_v5, %v1650_v62 }
 0xac9   :  { %1030 = vrot.lane.b32.xlu1 %v1026_v63, %s2032_s1 }
 0xaca   :  { %1032 = vrot.lane.b32.xlu0 %v1027_v0, %s2032_s1 }
 0xb3b   :  { %v1031_v1 = vpop.permute.xlu1 %1030 }
 0xb3c   :  { %v1033_v2 = vpop.permute.xlu0 %1032  ;;  %v1036_v4 = vadd.f32 %v1031_v1, %v1024_v55 }
 0xb3d   :  { %v1037_v6 = vadd.f32 %v1033_v2, %v1025_v57 }
 0xb3e   :  { %1970 = vtanh.f32 %v1036_v4  ;;  %v1166_v43 = vrot.slane %v1036_v4, 7 }
 0xb3f   :  { %1972 = vtanh.f32 %v1037_v6  ;;  %v1167_v45 = vrot.slane %v1037_v6, 7 }
 0xb48   :  { %v1971_v7 = vpop.eup %1970 }
 0xb49   :  { %v1973_v8 = vpop.eup %1972  ;;  %v1040_v9 = vmul.f32 %v1971_v7, %v1967_v56 }
 0xb4a   :  { %v1041_v12 = vmul.f32 %v1973_v8, %v1969_v58 }
 0xb4b   :  { %v1044_v13 = vrot.slane %v1040_v9, 5  ;;  %v1351_v14 = vrot.slane %v1040_v9, 3 }
 0xb4c   :  { %v1045_v15 = vrot.slane %v1041_v12, 4  ;;  %v1352_v19 = vrot.slane %v1041_v12, 2 }
 0xb4e   :  { %v1046_v20 = vsel %vm318_vm0, %v1045_v15, %v1044_v13  ;;  %v2332_v21 = vsel %vm1337_vm2, %v1352_v19, %v1351_v14 }
 0xb4f   :  { %1047 = vrot.lane.b32.xlu1 %v1046_v20, %s2032_s1  ;;  %v1370_v12 = vsel %vm1364_vm4, %v2311_v31, %v2332_v21 }
 0xbc1   :  { %v1048_v22 = vpop.permute.xlu1 %1047 }
 0xbc2   :  { %1651 = vmatmul.mubr.msk.f32.vlgmr.msra.gmra.mrb[6].mxu0 %vm182_vm1, %v1048_v22 }
 0xc95   :  { %v1117_v18 = vpop.f32.mrb[6].mxu0 }
 0xc96   :  { %v1124_v23 = vrot.slane %v1117_v18, 2  ;;  %v1126_v26 = vrot.slane %v1117_v18, 3  ;;  %v1119_v27 = vpop.f32.mrb[7].mxu0 }
 0xc97   :  { %v1125_v29 = vrot.slane %v1119_v27, 2  ;;  %v1127_v30 = vrot.slane %v1119_v27, 3 }
 0xc98   :  { %v1132_v33 = vadd.f32 %v1124_v23, %v2183_v47  ;;  %v1134_v35 = vadd.f32 %v1126_v26, %v2187_v48 }
 0xc99   :  { %v1133_v37 = vadd.f32 %v1125_v29, %v2185_v38  ;;  %v1135_v36 = vadd.f32 %v1127_v30, %v2190_v52 }
 0xc9a   :  { %v1652_v34 = vmul.f32 -1.442695, %v1132_v33  ;;  %v1654_v32 = vmul.f32 -1.442695, %v1134_v35 }
 0xc9b   :  { %v1653_v10 = vmul.f32 -1.442695, %v1133_v37  ;;  %v1655_v3 = vmul.f32 -1.442695, %v1135_v36 }
 0xc9c   :  { %1974 = vpow2.f32 %v1652_v34 }
 0xc9d   :  { %1976 = vpow2.f32 %v1654_v32 }
 0xc9e   :  { %1978 = vpow2.f32 %v1653_v10 }
 0xc9f   :  { %1980 = vpow2.f32 %v1655_v3 }
 0xca6   :  { %v1975_v11 = vpop.eup %1974 }
 0xca7   :  { %v1977_v16 = vpop.eup %1976  ;;  %v1148_v17 = vadd.f32 1.0, %v1975_v11 }
 0xca8   :  { %v1979_v41 = vpop.eup %1978  ;;  %v1150_v24 = vadd.f32 1.0, %v1977_v16 }
 0xca9   :  { %v1981_v42 = vpop.eup %1980  ;;  %1982 = vrcp.f32 %v1148_v17  ;;  %v1149_v25 = vadd.f32 1.0, %v1979_v41 }
 0xcaa   :  { %1984 = vrcp.f32 %v1150_v24  ;;  %v1151_v28 = vadd.f32 1.0, %v1981_v42 }
 0xcab   :  { %1986 = vrcp.f32 %v1149_v25 }
 0xcac   :  { %1988 = vrcp.f32 %v1151_v28 }
 0xcb3   :  { %v1983_v44 = vpop.eup %1982 }
 0xcb4   :  { %v1985_v46 = vpop.eup %1984  ;;  %v1170_v39 = vmul.f32 %v1983_v44, %v1166_v43 }
 0xcb5   :  { %v1987_v49 = vpop.eup %1986  ;;  %v1171_v50 = vmul.f32 %v1985_v46, %v1167_v45 }
 0xcb6   :  { %v1989_v51 = vpop.eup %1988  ;;  %v1160_v53 = vmul.f32 2.0, %v1987_v49 }
 0xcb7   :  { %v1161_v54 = vmul.f32 2.0, %v1989_v51 }
 0xcb8   :  { %v1656_v5 = vadd.f32 -1.0, %v1160_v53 }
 0xcb9   :  { %v1657_v55 = vadd.f32 -1.0, %v1161_v54 }
 0xcba   :  { %v1172_v56 = vmul.f32 %v1983_v44, %v1656_v5 }
 0xcbb   :  { %v1173_v57 = vmul.f32 %v1985_v46, %v1657_v55 }
 0xcbc   :  { %1176 = vrot.lane.b32.xlu0 %v1172_v56, %s2032_s1 }
 0xcbd   :  { %1178 = vrot.lane.b32.xlu1 %v1173_v57, %s2032_s1 }
 0xd2e   :  { %v1177_v58 = vpop.permute.xlu0 %1176 }
 0xd2f   :  { %v1179_v59 = vpop.permute.xlu1 %1178  ;;  %v1182_v60 = vadd.f32 %v1177_v58, %v1170_v39 }
 0xd30   :  { %v1183_v61 = vadd.f32 %v1179_v59, %v1171_v50 }
 0xd31   :  { %1990 = vtanh.f32 %v1182_v60 }
 0xd32   :  { %1992 = vtanh.f32 %v1183_v61  ;;  %v1313_v11 = vrot.slane %v1183_v61, 7 }
 0xd3b   :  { %v1991_v62 = vpop.eup %1990 }
 0xd3c   :  { %v1993_v63 = vpop.eup %1992  ;;  %v1186_v0 = vmul.f32 %v1991_v62, %v1987_v49 }
 0xd3d   :  { %v1187_v1 = vmul.f32 %v1993_v63, %v1989_v51 }
 0xd3e   :  { %v1190_v2 = vrot.slane %v1186_v0, 6  ;;  %v1355_v4 = vrot.slane %v1186_v0, 2 }
 0xd3f   :  { %v1191_v6 = vrot.slane %v1187_v1, 5  ;;  %v1356_v7 = vrot.slane %v1187_v1, 1 }
 0xd41   :  { %v1192_v8 = vsel %vm318_vm0, %v1191_v6, %v1190_v2  ;;  %v1357_v9 = vsel %vm1342_vm3, %v1356_v7, %v1355_v4  ;;  %v1470_v4 = vld [vmem:[%s2398_s4 + $0x8] sm:$0xff]  ;;  %v1469_v6 = vld [vmem:[%s2398_s4] sm:$0xff] }
 0xd42   :  { %1193 = vrot.lane.b32.xlu0 %v1192_v8, %s2032_s1  ;;  %v2349_v13 = vsel %vm1366_vm5, %v1370_v12, %v1357_v9 }
 0xdb4   :  { %v1194_v14 = vpop.permute.xlu0 %1193 }
 0xdb5   :  { %1658 = vmatmul.mubr.msk.f32.vlgmr.msra.gmra.mrb[6].mxu1 %vm182_vm1, %v1194_v14 }
 0xe88   :  { %v1263_v15 = vpop.f32.mrb[6].mxu1 }
 0xe89   :  { %v1270_v19 = vrot.slane %v1263_v15, 1  ;;  %v1272_v20 = vrot.slane %v1263_v15, 2  ;;  %v1265_v22 = vpop.f32.mrb[7].mxu1 }
 0xe8a   :  { %v1271_v18 = vrot.slane %v1265_v22, 1  ;;  %v1273_v23 = vrot.slane %v1265_v22, 2 }
 0xe8b   :  { %v1278_v26 = vadd.f32 %v1270_v19, %v2183_v47  ;;  %v1280_v27 = vadd.f32 %v1272_v20, %v2187_v48 }
 0xe8c   :  { %v1279_v31 = vadd.f32 %v1271_v18, %v2185_v38  ;;  %v1281_v21 = vadd.f32 %v1273_v23, %v2190_v52  ;;  %v1312_v52 = vrot.slane %v1182_v60, 7 }
 0xe8d   :  { %v1659_v29 = vmul.f32 -1.442695, %v1278_v26  ;;  %v1661_v30 = vmul.f32 -1.442695, %v1280_v27 }
 0xe8e   :  { %v1660_v33 = vmul.f32 -1.442695, %v1279_v31  ;;  %v1662_v35 = vmul.f32 -1.442695, %v1281_v21 }
 0xe8f   :  { %1994 = vpow2.f32 %v1659_v29 }
 0xe90   :  { %1996 = vpow2.f32 %v1661_v30 }
 0xe91   :  { %1998 = vpow2.f32 %v1660_v33 }
 0xe92   :  { %2000 = vpow2.f32 %v1662_v35 }
 0xe99   :  { %v1995_v37 = vpop.eup %1994 }
 0xe9a   :  { %v1997_v36 = vpop.eup %1996  ;;  %v1294_v34 = vadd.f32 1.0, %v1995_v37 }
 0xe9b   :  { %v1999_v32 = vpop.eup %1998  ;;  %v1296_v10 = vadd.f32 1.0, %v1997_v36 }
 0xe9c   :  { %v2001_v47 = vpop.eup %2000  ;;  %2002 = vrcp.f32 %v1294_v34  ;;  %v1295_v48 = vadd.f32 1.0, %v1999_v32  ;;  %v12_v34 = vstv %s2399_s6  ;;  %v1671_v32 = vld [vmem:[%s2400_s5] ss:$0 sm:$0xff] }
 0xe9d   :  { %2004 = vrcp.f32 %v1296_v10  ;;  %v1297_v38 = vadd.f32 1.0, %v2001_v47  ;;  %13 = vst [vmem:[#allocation2] sm:$0x1] %v12_v34 }
 0xe9e   :  { %2006 = vrcp.f32 %v1295_v48 }
 0xe9f   :  { %2008 = vrcp.f32 %v1297_v38 }
 0xea6   :  { %v2003_v3 = vpop.eup %2002 }
 0xea7   :  { %v2005_v16 = vpop.eup %2004  ;;  %v1316_v17 = vmul.f32 %v2003_v3, %v1312_v52 }
 0xea8   :  { %v2007_v41 = vpop.eup %2006  ;;  %v1317_v24 = vmul.f32 %v2005_v16, %v1313_v11  ;;  %v1672_v11 = vld [vmem:[#allocation2] ss:$0 sm:$0xff] }
 0xea9   :  { %v2009_v42 = vpop.eup %2008  ;;  %v1306_v25 = vmul.f32 2.0, %v2007_v41 }
 0xeaa   :  { %v1307_v28 = vmul.f32 2.0, %v2009_v42 }
 0xeab   :  { %v1663_v43 = vadd.f32 -1.0, %v1306_v25 }
 0xeac   :  { %v1664_v44 = vadd.f32 -1.0, %v1307_v28 }
 0xead   :  { %v1318_v45 = vmul.f32 %v2003_v3, %v1663_v43 }
 0xeae   :  { %v1319_v46 = vmul.f32 %v2005_v16, %v1664_v44 }
 0xeaf   :  { %1322 = vrot.lane.b32.xlu1 %v1318_v45, %s2032_s1 }
 0xeb0   :  { %1324 = vrot.lane.b32.xlu0 %v1319_v46, %s2032_s1 }
 0xeb4   :  { %1375 = vrot.lane.b32.xlu0 %v2291_v40, %s2033_s3 }
 0xf21   :  { %v1323_v39 = vpop.permute.xlu1 %1322 }
 0xf22   :  { %v1325_v49 = vpop.permute.xlu0 %1324  ;;  %v1328_v50 = vadd.f32 %v1323_v39, %v1316_v17 }
 0xf23   :  { %v1329_v51 = vadd.f32 %v1325_v49, %v1317_v24 }
 0xf24   :  { %2010 = vtanh.f32 %v1328_v50 }
 0xf25   :  { %2012 = vtanh.f32 %v1329_v51 }
 0xf26   :  { %v1376_v53 = vpop.permute.xlu0 %1375 }
 0xf27   :  { %1685 = vmatprep.mubr.msk.f32.mxu0 %vm1383_vm8, %v1376_v53 }
 0xf2e   :  { %v2011_v54 = vpop.eup %2010 }
 0xf2f   :  { %v2013_v5 = vpop.eup %2012  ;;  %v1332_v55 = vmul.f32 %v2011_v54, %v2007_v41 }
 0xf30   :  { %v1333_v56 = vmul.f32 %v2013_v5, %v2009_v42 }
 0xf31   :  { %v1361_v57 = vrot.slane %v1332_v55, 1 }
 0xf33   :  { %v1362_v58 = vsel %vm1347_vm6, %v1333_v56, %v1361_v57 }
 0xf34   :  { %v1372_v59 = vsel %vm1368_vm7, %v2349_v13, %v1362_v58 }
 0xf35   :  { %v1848_v60 = vpack.i.bf16 %v1372_v59, %v2291_v40 }
 0xf37   :  { %1849 = vrot.lane.b32.xlu1 %v1848_v60, %s2032_s1 }
 0xf3b   :  { %1377 = vrot.lane.b32.xlu1 %v1372_v59, %s2033_s3 }
 0xfa9   :  { %v1850_v61 = vpop.permute.xlu1 %1849 }
 0xfaa   :  { %v1852_v62 = vunpack.i.h.bf16 %v1850_v61  ;;  %v1851_v63 = vunpack.i.l.bf16 %v1850_v61 }
 0xfac   :  { %v1823_v0 = vpack.c.bf16 %v1852_v62, %v1851_v63 }
 0xfad   :  { %v1378_v1 = vpop.permute.xlu1 %1377 }
 0xfae   :  { %1825 = vmatprep.subr.msk.bf16.mxu0 %vm1824_vm9, %v1823_v0  ;;  %1830 = vmatprep.subr.bf16.mxu1 %v1823_v0 }
 0xfaf   :  { %1828 = vmatpush3.bf16.xpose.msk.msra.mxu0 %vm1824_vm9, %v1823_v0  ;;  %1832 = vmatpush3.bf16.msra.mxu1 %v1823_v0 }
 0xfb6   :  { %1686 = vmatmul.mubr.msk.f32.vlgmr.msra.gmra.mrb[8].mxu0 %vm1383_vm8, %v1378_v1 }
0x1089   :  { %v1687_v2 = vpop.f32.mrb[8].mxu0 }
0x108a   :  { %2014 = vtanh.f32 %v1687_v2  ;;  %v1458_v40 = vpop.f32.mrb[9].mxu0 }
0x108b   :  { %2016 = vtanh.f32 %v1458_v40 }
0x1094   :  { %v2015_v7 = vpop.eup %2014 }
0x1095   :  { %v2017_v8 = vpop.eup %2016  ;;  %v1472_v9 = vadd.f32 %v2015_v7, %v1470_v4 }
0x1096   :  { %v1471_v12 = vadd.f32 %v2017_v8, %v1469_v6 }
0x1097   :  { %v1477_v13 = vsel %vm1473_vm10, %v1472_v9, -inf }
0x1098   :  { %1478 = vmax.xlane.f32.xlu1 %v1477_v13  ;;  %v1474_v14 = vsel %vm1473_vm10, %v1471_v12, -inf }
0x1099   :  { %1475 = vmax.xlane.f32.xlu0 %v1474_v14 }
0x1125   :  { %v1479_v15 = vpop.xlane.xlu1 %1478 }
0x1126   :  { %v1481_v19 = vsub.f32 %v1472_v9, %v1479_v15  ;;  %v1476_v20 = vpop.xlane.xlu0 %1475 }
0x1127   :  { %v1480_v22 = vsub.f32 %v1471_v12, %v1476_v20 }
0x1128   :  { %v1484_v18 = vmul.f32 1.442695, %v1481_v19 }
0x1129   :  { %v1482_v23 = vmul.f32 1.442695, %v1480_v22 }
0x112b   :  { %2018 = vpow2.f32 %v1482_v23 }
0x112c   :  { %2020 = vpow2.f32 %v1484_v18 }
0x1135   :  { %v2019_v26 = vpop.eup %2018 }
0x1136   :  { %v1486_v27 = vsel %vm1473_vm10, %v2019_v26, 0.0  ;;  %v2021_v31 = vpop.eup %2020 }
0x1137   :  { %1487 = vadd.xlane.f32.xlu0 %v1486_v27  ;;  %v1489_v21 = vsel %vm1473_vm10, %v2021_v31, 0.0 }
0x113b   :  { %1490 = vadd.xlane.f32.xlu0 %v1489_v21 }
0x11c4   :  { %v1488_v29 = vpop.xlane.xlu0 %1487 }
0x11c5   :  { %2022 = vrcp.f32 %v1488_v29 }
0x11c8   :  { %v1491_v30 = vpop.xlane.xlu0 %1490 }
0x11c9   :  { %2024 = vrcp.f32 %v1491_v30 }
0x11cf   :  { %v2023_v33 = vpop.eup %2022 }
0x11d0   :  { %v1493_v35 = vmul.f32 %v2023_v33, %v2019_v26 }
0x11d2   :  { %1692 = vmatprep.mubr.msk.f32.mxu1 %vm1473_vm10, %v1493_v35 }
0x11d3   :  { %v2025_v37 = vpop.eup %2024 }
0x11d4   :  { %v1495_v36 = vmul.f32 %v2025_v37, %v2021_v31 }
0x11d6   :  { %1693 = vmatmul.mubr.msk.f32.vlgmr.msra.gmra.mrb[8].mxu1 %vm1473_vm10, %v1495_v36 }
0x12a9   :  { %v1694_v10 = vpop.f32.mrb[8].mxu1 }
0x12aa   :  { %v1587_v47 = vmul.f32 %v1694_v10, %v1671_v32  ;;  %v1570_v48 = vpop.f32.mrb[9].mxu1 }
0x12ab   :  { %v1586_v38 = vmul.f32 %v1671_v32, %v1570_v48 }
0x12ac   :  { %v1591_v52 = vsel %vm1383_vm8, %v1587_v47, 0.0 }
0x12ad   :  { %1592 = vadd.xlane.f32.xlu0 %v1591_v52  ;;  %v1588_v3 = vsel %vm1383_vm8, %v1586_v38, 0.0 }
0x12ae   :  { %1589 = vadd.xlane.f32.xlu1 %v1588_v3 }
0x133a   :  { %v1593_v16 = vpop.xlane.xlu0 %1592 }
0x133b   :  { %v1602_v17 = vadd.f32 %v1672_v11, %v1593_v16  ;;  %v1590_v41 = vpop.xlane.xlu1 %1589 }
0x133c   :  { %v1601_v24 = vadd.f32 %v1672_v11, %v1590_v41 }
0x133d   :  { %1605 = vst.msk [vmem:[%s2401_s7 + $0x8] sm:$0xff] %vm1603_vm11, %v1602_v17 }
0x133e   :  { %1604 = vst.msk [vmem:[%s2401_s7] sm:$0xff] %vm1603_vm11, %v1601_v24 }

</bundles_post_ra>
